<compile_context>
chip_gen: v7x
topology: tpu7x:2x2x1
jax: 0.10.0
libtpu: 0.0.40
codegen_flags: <defaults>
</compile_context>

<pallas_src>
import jax
import jax.numpy as jnp
from jax import lax
from jax.experimental import pallas as pl
from jax.experimental.pallas import tpu as pltpu


def _sepconv_kernel(xm_ref, xh_ref, dw_ref, pw_ref, o_ref, dacc_ref):
    """One (batch, row-tile) grid step.

    xm_ref:   (1, TH, W+2, C)  main rows of the zero-padded NHWC input window (bf16)
    xh_ref:   (1, 2,  W+2, C)  2-row bottom halo of this tile's window (bf16)
    dw_ref:   (3, 3, C)        depthwise weights, HWC layout (f32)
    pw_ref:   (C, Coutp)       pointwise weights, lane-padded (bf16)
    o_ref :   (1, TH, W, Coutp)
    dacc_ref: (TH, W, C) f32   VMEM scratch: depthwise output / accumulator
    """
    TH = o_ref.shape[1]
    W = o_ref.shape[2]
    Coutp = o_ref.shape[3]
    C = xm_ref.shape[3]

    dacc_ref[...] = jnp.zeros_like(dacc_ref)
    dw = dw_ref[...]                                   # (3, 3, C) f32, tiny

    # Depthwise 3x3 on the VPU, f32 accumulation.  Only 3 kw-shifted (sublane)
    # views are materialized per tile; kh handling is pure major-axis slicing
    # split between the main block and the 2-row halo (no concat temporary).
    for kw in range(3):
        xm_kw = xm_ref[0, :, kw:kw + W, :].astype(jnp.float32)    # (TH, W, C)
        xh_kw = xh_ref[0, :, kw:kw + W, :].astype(jnp.float32)    # (2,  W, C)
        for kh in range(3):
            w_tap = dw[kh, kw]                                     # (C,)
            # main rows: xm[kh:TH] -> output rows [0, TH-kh)
            dacc_ref[0:TH - kh] += xm_kw[kh:TH] * w_tap
            # halo rows: xh[0:kh] -> output rows [TH-kh, TH)
            if kh > 0:
                dacc_ref[TH - kh:TH] += xh_kw[0:kh] * w_tap

    # Single pointwise matmul on the MXU (bf16 inputs, f32 accumulation).
    lhs = dacc_ref[...].astype(pw_ref.dtype).reshape(TH * W, C)
    out = jnp.dot(lhs, pw_ref[...], preferred_element_type=jnp.float32)
    o_ref[0] = out.reshape(TH, W, Coutp).astype(o_ref.dtype)


def _vmem_capacity_bytes():
    try:
        info = pltpu.get_tpu_info()
        cap = getattr(info, "vmem_capacity_bytes", None)
        if cap:
            return int(cap)
    except Exception:
        pass
    return 64 * 1024 * 1024  # conservative (v7x per-TC VMEM)


def _per_step_vmem_bytes(th, W, C, coutp, in_item, out_item):
    Wp = W + 2
    # Double-buffered pipeline copies.
    pipe = 2 * (th * Wp * C * in_item          # main input tile
                + 2 * Wp * C * in_item         # 2-row halo tile
                + 9 * C * 4                    # depthwise weights (f32)
                + C * coutp * in_item          # pointwise weights
                + th * W * coutp * out_item)   # output tile
    # In-kernel live temporaries (conservative).
    tmp = (th * W * C * 4                      # depthwise f32 scratch
           + 3 * th * W * C * 4                # kw-shifted f32 views
           + th * W * C * in_item              # bf16 LHS of the matmul
           + th * W * coutp * 4)               # f32 matmul result before store cast
    return pipe + tmp


def _even_ceil(v):
    return max(2, (v + 1) // 2 * 2)


def _pick_tile_h(H, W, C, coutp, in_item, out_item, budget_bytes, th_cap):
    best = None
    for th in range(2, th_cap + 1, 2):
        if _per_step_vmem_bytes(th, W, C, coutp, in_item, out_item) <= budget_bytes:
            best = th
        else:
            break
    if best is None:
        raise ValueError(
            f"even TH=2 exceeds the VMEM budget ({budget_bytes} B) for "
            f"W={W}, C={C}, Coutp={coutp}")
    return best


def separable_conv2d(x_nchw, dw_weight, pw_weight, *, tile_h=None,
                     compute_dtype=jnp.bfloat16):
    """x_nchw: (N, C, H, W); dw_weight: (C, 1, 3, 3) torch layout;
    pw_weight: (Cout, C, 1, 1) torch layout.  Returns NCHW output (input dtype)."""
    N, C, H, W = x_nchw.shape
    Cout = pw_weight.shape[0]
    Coutp = ((Cout + 127) // 128) * 128                # lane-dense output stores
    out_dtype = x_nchw.dtype
    in_item = jnp.dtype(compute_dtype).itemsize
    out_item = jnp.dtype(out_dtype).itemsize

    # Generation-aware VMEM budgets (v7x: 64 MiB; v5e/v6e: 128 MiB).
    vmem_cap = _vmem_capacity_bytes()
    budget = int(vmem_cap * 0.70)
    vmem_limit = int(vmem_cap * 7 // 8)

    th_cap = _even_ceil(min(256, H))
    if N == 1:
        # keep >= 2 grid steps so both v7x TensorCores get work
        th_cap = min(th_cap, _even_ceil((H + 1) // 2))

    if tile_h is None:
        TH = _pick_tile_h(H, W, C, Coutp, in_item, out_item, budget, th_cap)
    else:
        TH = int(tile_h)
        assert TH >= 2 and TH % 2 == 0, "tile_h must be even and >= 2"

    HT = -(-H // TH)           # cdiv: TH need not divide H
    H_pad = HT * TH
    half_th = TH // 2

    # Glue in plain JAX (transpose + cast + pad fuse into one pass over HBM).
    # TODO(synk): fuse NCHW->NHWC into the producer and handle the 1-px halo
    # in-kernel with masked taps / pl.when to drop this extra HBM round-trip.
    x_nhwc = jnp.transpose(x_nchw, (0, 2, 3, 1)).astype(compute_dtype)  # (N,H,W,C)
    # 1-px conv halo on all sides of H/W, plus bottom rows up to H_pad (all zeros).
    x_padded = jnp.pad(x_nhwc,
                       ((0, 0), (1, 1 + (H_pad - H)), (1, 1), (0, 0)))
    # x_padded: (N, H_pad + 2, W + 2, C)

    # Depthwise weights -> (3, 3, C) f32 (VPU); pointwise -> (C, Coutp) bf16 (MXU).
    dw = jnp.transpose(dw_weight[:, 0, :, :], (1, 2, 0)).astype(jnp.float32)
    pw = jnp.transpose(pw_weight[:, :, 0, 0], (1, 0))                    # (C, Cout)
    pw = jnp.pad(pw, ((0, 0), (0, Coutp - Cout))).astype(compute_dtype)

    flops = 2 * N * H_pad * W * (9 * C + C * Coutp)
    bytes_accessed = (x_padded.size * in_item + dw.size * 4 + pw.size * in_item
                      + N * H_pad * W * Coutp * out_item)

    out_nhwc = pl.pallas_call(
        _sepconv_kernel,
        out_shape=jax.ShapeDtypeStruct((N, H_pad, W, Coutp), out_dtype),
        grid_spec=pltpu.PrefetchScalarGridSpec(
            num_scalar_prefetch=0,
            grid=(N, HT),
            in_specs=[
                # main TH rows of this tile's padded window
                pl.BlockSpec((1, TH, W + 2, C), lambda n, h: (n, h, 0, 0)),
                # 2-row bottom halo: block index (h+1)*TH/2 * block(2) = element (h+1)*TH
                pl.BlockSpec((1, 2, W + 2, C),
                             lambda n, h: (n, (h + 1) * half_th, 0, 0)),
                # weights (small, constant index -> effectively resident)
                pl.BlockSpec((3, 3, C), lambda n, h: (0, 0, 0)),
                pl.BlockSpec((C, Coutp), lambda n, h: (0, 0)),
            ],
            out_specs=pl.BlockSpec((1, TH, W, Coutp), lambda n, h: (n, h, 0, 0)),
            scratch_shapes=[pltpu.VMEM((TH, W, C), jnp.float32)],
        ),
        compiler_params=pltpu.CompilerParams(
            dimension_semantics=("parallel", "parallel"),
            vmem_limit_bytes=vmem_limit),
        cost_estimate=pl.CostEstimate(flops=flops, transcendentals=0,
                                      bytes_accessed=bytes_accessed),
    )(x_padded, x_padded, dw, pw)

    out_nhwc = out_nhwc[:, :H, :, :Cout]            # strip row + lane padding
    return jnp.transpose(out_nhwc, (0, 3, 1, 2))    # back to NCHW


def _reference(x_nchw, dw_weight, pw_weight):
    """Pure-JAX f32 reference (NCHW, matches torch semantics) for validation."""
    C = x_nchw.shape[1]
    dn = lax.conv_dimension_numbers(x_nchw.shape, dw_weight.shape,
                                    ("NCHW", "OIHW", "NCHW"))
    y = lax.conv_general_dilated(
        x_nchw, dw_weight, window_strides=(1, 1), padding=((1, 1), (1, 1)),
        dimension_numbers=dn, feature_group_count=C)
    dn2 = lax.conv_dimension_numbers(y.shape, pw_weight.shape,
                                     ("NCHW", "OIHW", "NCHW"))
    return lax.conv_general_dilated(
        y, pw_weight, window_strides=(1, 1), padding=((0, 0), (0, 0)),
        dimension_numbers=dn2)


if __name__ == "__main__":
    key = jax.random.PRNGKey(0)
    k_x, k_dw, k_pw = jax.random.split(key, 3)

    N, C_in, C_out, H, W = 2, 4, 8, 16, 16

    x = jax.random.normal(k_x, (N, C_in, H, W), dtype=jnp.float32)
    # Deterministic synthetic parameters (torch Conv2d weight layouts).
    dw_weight = jax.random.normal(k_dw, (C_in, 1, 3, 3), dtype=jnp.float32) * 0.1
    pw_weight = jax.random.normal(k_pw, (C_out, C_in, 1, 1), dtype=jnp.float32) * 0.1

    # tile_h=8 -> grid (N, 2): exercises the row-tile axis and the halo spec.
    out = separable_conv2d(x, dw_weight, pw_weight, tile_h=8)
    out = jax.block_until_ready(out)

    ref = _reference(x, dw_weight, pw_weight)
    assert out.shape == (N, C_out, H, W), out.shape
    max_err = float(jnp.max(jnp.abs(out - ref)))
    # bf16 activations / bf16 pointwise inputs with f32 accumulation -> loosened tols.
    assert jnp.allclose(out, ref, atol=2e-2, rtol=2e-2), \
        f"mismatch vs reference (max abs err {max_err})"

    print("KERNEL_OK")
</pallas_src>

<mosaic_0001>
module attributes {stable_mosaic.version = 11 : i64} {
  func.func @_sepconv_kernel(%arg0: i32, %arg1: i32, %arg2: memref<1x8x18x4xbf16, #tpu.memory_space<vmem>>, %arg3: memref<1x2x18x4xbf16, #tpu.memory_space<vmem>>, %arg4: memref<3x3x4xf32, #tpu.memory_space<vmem>>, %arg5: memref<4x128xbf16, #tpu.memory_space<vmem>>, %arg6: memref<1x8x16x128xf32, #tpu.memory_space<vmem>>, %arg7: memref<8x16x4xf32, #tpu.memory_space<vmem>>) attributes {dimension_semantics = [#tpu.dimension_semantics<parallel>, #tpu.dimension_semantics<parallel>], iteration_bounds = array<i64: 2, 2>, scalar_prefetch = 0 : i64, scratch_operands = 1 : i64, tpu.core_type = #tpu.core_type<tc>, window_params = [{transform_indices = @transform_0, window_bounds = array<i64: 1, 8, 18, 4>}, {transform_indices = @transform_1, window_bounds = array<i64: 1, 2, 18, 4>}, {pipeline_mode = #tpu.pipeline_mode<synchronous>, transform_indices = @transform_2, window_bounds = array<i64: 3, 3, 4>}, {pipeline_mode = #tpu.pipeline_mode<synchronous>, transform_indices = @transform_3, window_bounds = array<i64: 4, 128>}, {transform_indices = @transform_4, window_bounds = array<i64: 1, 8, 16, 128>}]} {
    %cst = arith.constant 0.000000e+00 : f32
    %0 = vector.broadcast %cst : f32 to vector<8x16x4xf32>
    %c0 = arith.constant 0 : index
    %c0_0 = arith.constant 0 : index
    %c0_1 = arith.constant 0 : index
    %1 = vector.load %arg7[%c0, %c0_0, %c0_1] : memref<8x16x4xf32, #tpu.memory_space<vmem>>, vector<8x16x4xf32>
    tpu.vector_store %arg7[%c0, %c0_0, %c0_1], %0 {strides = array<i32>} : memref<8x16x4xf32, #tpu.memory_space<vmem>>, vector<8x16x4xf32>,
    %c0_2 = arith.constant 0 : index
    %c0_3 = arith.constant 0 : index
    %c0_4 = arith.constant 0 : index
    %2 = vector.load %arg4[%c0_2, %c0_3, %c0_4] : memref<3x3x4xf32, #tpu.memory_space<vmem>>, vector<3x3x4xf32>
    %c0_5 = arith.constant 0 : index
    %c0_6 = arith.constant 0 : index
    %c0_7 = arith.constant 0 : index
    %c0_8 = arith.constant 0 : index
    %3 = vector.load %arg2[%c0_5, %c0_6, %c0_7, %c0_8] : memref<1x8x18x4xbf16, #tpu.memory_space<vmem>>, vector<1x8x16x4xbf16>
    %4 = vector.shape_cast %3 : vector<1x8x16x4xbf16> to vector<8x16x4xbf16>
    %5 = arith.extf %4 : vector<8x16x4xbf16> to vector<8x16x4xf32>
    %c0_9 = arith.constant 0 : index
    %c0_10 = arith.constant 0 : index
    %c0_11 = arith.constant 0 : index
    %c0_12 = arith.constant 0 : index
    %6 = vector.load %arg3[%c0_9, %c0_10, %c0_11, %c0_12] : memref<1x2x18x4xbf16, #tpu.memory_space<vmem>>, vector<1x2x16x4xbf16>
    %7 = vector.shape_cast %6 : vector<1x2x16x4xbf16> to vector<2x16x4xbf16>
    %8 = arith.extf %7 : vector<2x16x4xbf16> to vector<2x16x4xf32>
    %9 = vector.extract_strided_slice %2 {offsets = [0, 0, 0], sizes = [1, 1, 4], strides = [1, 1, 1]} : vector<3x3x4xf32> to vector<1x1x4xf32>
    %10 = vector.shape_cast %9 : vector<1x1x4xf32> to vector<4xf32>
    %c0_13 = arith.constant 0 : index
    %c0_14 = arith.constant 0 : index
    %c0_15 = arith.constant 0 : index
    %11 = vector.load %arg7[%c0_13, %c0_14, %c0_15] : memref<8x16x4xf32, #tpu.memory_space<vmem>>, vector<8x16x4xf32>
    %12 = vector.shape_cast %10 : vector<4xf32> to vector<1x1x4xf32>
    %13 = vector.broadcast %12 : vector<1x1x4xf32> to vector<8x16x4xf32>
    %14 = arith.mulf %5, %13 : vector<8x16x4xf32>
    %15 = arith.addf %11, %14 : vector<8x16x4xf32>
    %c0_16 = arith.constant 0 : index
    %c0_17 = arith.constant 0 : index
    %c0_18 = arith.constant 0 : index
    %16 = vector.load %arg7[%c0_16, %c0_17, %c0_18] : memref<8x16x4xf32, #tpu.memory_space<vmem>>, vector<8x16x4xf32>
    tpu.vector_store %arg7[%c0_16, %c0_17, %c0_18], %15 {strides = array<i32>} : memref<8x16x4xf32, #tpu.memory_space<vmem>>, vector<8x16x4xf32>,
    %17 = vector.extract_strided_slice %2 {offsets = [1, 0, 0], sizes = [1, 1, 4], strides = [1, 1, 1]} : vector<3x3x4xf32> to vector<1x1x4xf32>
    %18 = vector.shape_cast %17 : vector<1x1x4xf32> to vector<4xf32>
    %c0_19 = arith.constant 0 : index
    %c0_20 = arith.constant 0 : index
    %c0_21 = arith.constant 0 : index
    %19 = vector.load %arg7[%c0_19, %c0_20, %c0_21] : memref<8x16x4xf32, #tpu.memory_space<vmem>>, vector<7x16x4xf32>
    %20 = vector.extract_strided_slice %5 {offsets = [1, 0, 0], sizes = [7, 16, 4], strides = [1, 1, 1]} : vector<8x16x4xf32> to vector<7x16x4xf32>
    %21 = vector.shape_cast %18 : vector<4xf32> to vector<1x1x4xf32>
    %22 = vector.broadcast %21 : vector<1x1x4xf32> to vector<7x16x4xf32>
    %23 = arith.mulf %20, %22 : vector<7x16x4xf32>
    %24 = arith.addf %19, %23 : vector<7x16x4xf32>
    %c0_22 = arith.constant 0 : index
    %c0_23 = arith.constant 0 : index
    %c0_24 = arith.constant 0 : index
    %25 = vector.load %arg7[%c0_22, %c0_23, %c0_24] : memref<8x16x4xf32, #tpu.memory_space<vmem>>, vector<7x16x4xf32>
    tpu.vector_store %arg7[%c0_22, %c0_23, %c0_24], %24 {strides = array<i32>} : memref<8x16x4xf32, #tpu.memory_space<vmem>>, vector<7x16x4xf32>,
    %c7 = arith.constant 7 : index
    %c0_25 = arith.constant 0 : index
    %c0_26 = arith.constant 0 : index
    %26 = vector.load %arg7[%c7, %c0_25, %c0_26] : memref<8x16x4xf32, #tpu.memory_space<vmem>>, vector<1x16x4xf32>
    %27 = vector.extract_strided_slice %8 {offsets = [0, 0, 0], sizes = [1, 16, 4], strides = [1, 1, 1]} : vector<2x16x4xf32> to vector<1x16x4xf32>
    %28 = vector.shape_cast %18 : vector<4xf32> to vector<1x1x4xf32>
    %29 = vector.broadcast %28 : vector<1x1x4xf32> to vector<1x16x4xf32>
    %30 = arith.mulf %27, %29 : vector<1x16x4xf32>
    %31 = arith.addf %26, %30 : vector<1x16x4xf32>
    %c7_27 = arith.constant 7 : index
    %c0_28 = arith.constant 0 : index
    %c0_29 = arith.constant 0 : index
    %32 = vector.load %arg7[%c7_27, %c0_28, %c0_29] : memref<8x16x4xf32, #tpu.memory_space<vmem>>, vector<1x16x4xf32>
    tpu.vector_store %arg7[%c7_27, %c0_28, %c0_29], %31 {strides = array<i32>} : memref<8x16x4xf32, #tpu.memory_space<vmem>>, vector<1x16x4xf32>,
    %33 = vector.extract_strided_slice %2 {offsets = [2, 0, 0], sizes = [1, 1, 4], strides = [1, 1, 1]} : vector<3x3x4xf32> to vector<1x1x4xf32>
    %34 = vector.shape_cast %33 : vector<1x1x4xf32> to vector<4xf32>
    %c0_30 = arith.constant 0 : index
    %c0_31 = arith.constant 0 : index
    %c0_32 = arith.constant 0 : index
    %35 = vector.load %arg7[%c0_30, %c0_31, %c0_32] : memref<8x16x4xf32, #tpu.memory_space<vmem>>, vector<6x16x4xf32>
    %36 = vector.extract_strided_slice %5 {offsets = [2, 0, 0], sizes = [6, 16, 4], strides = [1, 1, 1]} : vector<8x16x4xf32> to vector<6x16x4xf32>
    %37 = vector.shape_cast %34 : vector<4xf32> to vector<1x1x4xf32>
    %38 = vector.broadcast %37 : vector<1x1x4xf32> to vector<6x16x4xf32>
    %39 = arith.mulf %36, %38 : vector<6x16x4xf32>
    %40 = arith.addf %35, %39 : vector<6x16x4xf32>
    %c0_33 = arith.constant 0 : index
    %c0_34 = arith.constant 0 : index
    %c0_35 = arith.constant 0 : index
    %41 = vector.load %arg7[%c0_33, %c0_34, %c0_35] : memref<8x16x4xf32, #tpu.memory_space<vmem>>, vector<6x16x4xf32>
    tpu.vector_store %arg7[%c0_33, %c0_34, %c0_35], %40 {strides = array<i32>} : memref<8x16x4xf32, #tpu.memory_space<vmem>>, vector<6x16x4xf32>,
    %c6 = arith.constant 6 : index
    %c0_36 = arith.constant 0 : index
    %c0_37 = arith.constant 0 : index
    %42 = vector.load %arg7[%c6, %c0_36, %c0_37] : memref<8x16x4xf32, #tpu.memory_space<vmem>>, vector<2x16x4xf32>
    %43 = vector.shape_cast %34 : vector<4xf32> to vector<1x1x4xf32>
    %44 = vector.broadcast %43 : vector<1x1x4xf32> to vector<2x16x4xf32>
    %45 = arith.mulf %8, %44 : vector<2x16x4xf32>
    %46 = arith.addf %42, %45 : vector<2x16x4xf32>
    %c6_38 = arith.constant 6 : index
    %c0_39 = arith.constant 0 : index
    %c0_40 = arith.constant 0 : index
    %47 = vector.load %arg7[%c6_38, %c0_39, %c0_40] : memref<8x16x4xf32, #tpu.memory_space<vmem>>, vector<2x16x4xf32>
    tpu.vector_store %arg7[%c6_38, %c0_39, %c0_40], %46 {strides = array<i32>} : memref<8x16x4xf32, #tpu.memory_space<vmem>>, vector<2x16x4xf32>,
    %c0_41 = arith.constant 0 : index
    %c0_42 = arith.constant 0 : index
    %c1 = arith.constant 1 : index
    %c0_43 = arith.constant 0 : index
    %48 = vector.load %arg2[%c0_41, %c0_42, %c1, %c0_43] : memref<1x8x18x4xbf16, #tpu.memory_space<vmem>>, vector<1x8x16x4xbf16>
    %49 = vector.shape_cast %48 : vector<1x8x16x4xbf16> to vector<8x16x4xbf16>
    %50 = arith.extf %49 : vector<8x16x4xbf16> to vector<8x16x4xf32>
    %c0_44 = arith.constant 0 : index
    %c0_45 = arith.constant 0 : index
    %c1_46 = arith.constant 1 : index
    %c0_47 = arith.constant 0 : index
    %51 = vector.load %arg3[%c0_44, %c0_45, %c1_46, %c0_47] : memref<1x2x18x4xbf16, #tpu.memory_space<vmem>>, vector<1x2x16x4xbf16>
    %52 = vector.shape_cast %51 : vector<1x2x16x4xbf16> to vector<2x16x4xbf16>
    %53 = arith.extf %52 : vector<2x16x4xbf16> to vector<2x16x4xf32>
    %54 = vector.extract_strided_slice %2 {offsets = [0, 1, 0], sizes = [1, 1, 4], strides = [1, 1, 1]} : vector<3x3x4xf32> to vector<1x1x4xf32>
    %55 = vector.shape_cast %54 : vector<1x1x4xf32> to vector<4xf32>
    %c0_48 = arith.constant 0 : index
    %c0_49 = arith.constant 0 : index
    %c0_50 = arith.constant 0 : index
    %56 = vector.load %arg7[%c0_48, %c0_49, %c0_50] : memref<8x16x4xf32, #tpu.memory_space<vmem>>, vector<8x16x4xf32>
    %57 = vector.shape_cast %55 : vector<4xf32> to vector<1x1x4xf32>
    %58 = vector.broadcast %57 : vector<1x1x4xf32> to vector<8x16x4xf32>
    %59 = arith.mulf %50, %58 : vector<8x16x4xf32>
    %60 = arith.addf %56, %59 : vector<8x16x4xf32>
    %c0_51 = arith.constant 0 : index
    %c0_52 = arith.constant 0 : index
    %c0_53 = arith.constant 0 : index
    %61 = vector.load %arg7[%c0_51, %c0_52, %c0_53] : memref<8x16x4xf32, #tpu.memory_space<vmem>>, vector<8x16x4xf32>
    tpu.vector_store %arg7[%c0_51, %c0_52, %c0_53], %60 {strides = array<i32>} : memref<8x16x4xf32, #tpu.memory_space<vmem>>, vector<8x16x4xf32>,
    %62 = vector.extract_strided_slice %2 {offsets = [1, 1, 0], sizes = [1, 1, 4], strides = [1, 1, 1]} : vector<3x3x4xf32> to vector<1x1x4xf32>
    %63 = vector.shape_cast %62 : vector<1x1x4xf32> to vector<4xf32>
    %c0_54 = arith.constant 0 : index
    %c0_55 = arith.constant 0 : index
    %c0_56 = arith.constant 0 : index
    %64 = vector.load %arg7[%c0_54, %c0_55, %c0_56] : memref<8x16x4xf32, #tpu.memory_space<vmem>>, vector<7x16x4xf32>
    %65 = vector.extract_strided_slice %50 {offsets = [1, 0, 0], sizes = [7, 16, 4], strides = [1, 1, 1]} : vector<8x16x4xf32> to vector<7x16x4xf32>
    %66 = vector.shape_cast %63 : vector<4xf32> to vector<1x1x4xf32>
    %67 = vector.broadcast %66 : vector<1x1x4xf32> to vector<7x16x4xf32>
    %68 = arith.mulf %65, %67 : vector<7x16x4xf32>
    %69 = arith.addf %64, %68 : vector<7x16x4xf32>
    %c0_57 = arith.constant 0 : index
    %c0_58 = arith.constant 0 : index
    %c0_59 = arith.constant 0 : index
    %70 = vector.load %arg7[%c0_57, %c0_58, %c0_59] : memref<8x16x4xf32, #tpu.memory_space<vmem>>, vector<7x16x4xf32>
    tpu.vector_store %arg7[%c0_57, %c0_58, %c0_59], %69 {strides = array<i32>} : memref<8x16x4xf32, #tpu.memory_space<vmem>>, vector<7x16x4xf32>,
    %c7_60 = arith.constant 7 : index
    %c0_61 = arith.constant 0 : index
    %c0_62 = arith.constant 0 : index
    %71 = vector.load %arg7[%c7_60, %c0_61, %c0_62] : memref<8x16x4xf32, #tpu.memory_space<vmem>>, vector<1x16x4xf32>
    %72 = vector.extract_strided_slice %53 {offsets = [0, 0, 0], sizes = [1, 16, 4], strides = [1, 1, 1]} : vector<2x16x4xf32> to vector<1x16x4xf32>
    %73 = vector.shape_cast %63 : vector<4xf32> to vector<1x1x4xf32>
    %74 = vector.broadcast %73 : vector<1x1x4xf32> to vector<1x16x4xf32>
    %75 = arith.mulf %72, %74 : vector<1x16x4xf32>
    %76 = arith.addf %71, %75 : vector<1x16x4xf32>
    %c7_63 = arith.constant 7 : index
    %c0_64 = arith.constant 0 : index
    %c0_65 = arith.constant 0 : index
    %77 = vector.load %arg7[%c7_63, %c0_64, %c0_65] : memref<8x16x4xf32, #tpu.memory_space<vmem>>, vector<1x16x4xf32>
    tpu.vector_store %arg7[%c7_63, %c0_64, %c0_65], %76 {strides = array<i32>} : memref<8x16x4xf32, #tpu.memory_space<vmem>>, vector<1x16x4xf32>,
    %78 = vector.extract_strided_slice %2 {offsets = [2, 1, 0], sizes = [1, 1, 4], strides = [1, 1, 1]} : vector<3x3x4xf32> to vector<1x1x4xf32>
    %79 = vector.shape_cast %78 : vector<1x1x4xf32> to vector<4xf32>
    %c0_66 = arith.constant 0 : index
    %c0_67 = arith.constant 0 : index
    %c0_68 = arith.constant 0 : index
    %80 = vector.load %arg7[%c0_66, %c0_67, %c0_68] : memref<8x16x4xf32, #tpu.memory_space<vmem>>, vector<6x16x4xf32>
    %81 = vector.extract_strided_slice %50 {offsets = [2, 0, 0], sizes = [6, 16, 4], strides = [1, 1, 1]} : vector<8x16x4xf32> to vector<6x16x4xf32>
    %82 = vector.shape_cast %79 : vector<4xf32> to vector<1x1x4xf32>
    %83 = vector.broadcast %82 : vector<1x1x4xf32> to vector<6x16x4xf32>
    %84 = arith.mulf %81, %83 : vector<6x16x4xf32>
    %85 = arith.addf %80, %84 : vector<6x16x4xf32>
    %c0_69 = arith.constant 0 : index
    %c0_70 = arith.constant 0 : index
    %c0_71 = arith.constant 0 : index
    %86 = vector.load %arg7[%c0_69, %c0_70, %c0_71] : memref<8x16x4xf32, #tpu.memory_space<vmem>>, vector<6x16x4xf32>
    tpu.vector_store %arg7[%c0_69, %c0_70, %c0_71], %85 {strides = array<i32>} : memref<8x16x4xf32, #tpu.memory_space<vmem>>, vector<6x16x4xf32>,
    %c6_72 = arith.constant 6 : index
    %c0_73 = arith.constant 0 : index
    %c0_74 = arith.constant 0 : index
    %87 = vector.load %arg7[%c6_72, %c0_73, %c0_74] : memref<8x16x4xf32, #tpu.memory_space<vmem>>, vector<2x16x4xf32>
    %88 = vector.shape_cast %79 : vector<4xf32> to vector<1x1x4xf32>
    %89 = vector.broadcast %88 : vector<1x1x4xf32> to vector<2x16x4xf32>
    %90 = arith.mulf %53, %89 : vector<2x16x4xf32>
    %91 = arith.addf %87, %90 : vector<2x16x4xf32>
    %c6_75 = arith.constant 6 : index
    %c0_76 = arith.constant 0 : index
    %c0_77 = arith.constant 0 : index
    %92 = vector.load %arg7[%c6_75, %c0_76, %c0_77] : memref<8x16x4xf32, #tpu.memory_space<vmem>>, vector<2x16x4xf32>
    tpu.vector_store %arg7[%c6_75, %c0_76, %c0_77], %91 {strides = array<i32>} : memref<8x16x4xf32, #tpu.memory_space<vmem>>, vector<2x16x4xf32>,
    %c0_78 = arith.constant 0 : index
    %c0_79 = arith.constant 0 : index
    %c2 = arith.constant 2 : index
    %c0_80 = arith.constant 0 : index
    %93 = vector.load %arg2[%c0_78, %c0_79, %c2, %c0_80] : memref<1x8x18x4xbf16, #tpu.memory_space<vmem>>, vector<1x8x16x4xbf16>
    %94 = vector.shape_cast %93 : vector<1x8x16x4xbf16> to vector<8x16x4xbf16>
    %95 = arith.extf %94 : vector<8x16x4xbf16> to vector<8x16x4xf32>
    %c0_81 = arith.constant 0 : index
    %c0_82 = arith.constant 0 : index
    %c2_83 = arith.constant 2 : index
    %c0_84 = arith.constant 0 : index
    %96 = vector.load %arg3[%c0_81, %c0_82, %c2_83, %c0_84] : memref<1x2x18x4xbf16, #tpu.memory_space<vmem>>, vector<1x2x16x4xbf16>
    %97 = vector.shape_cast %96 : vector<1x2x16x4xbf16> to vector<2x16x4xbf16>
    %98 = arith.extf %97 : vector<2x16x4xbf16> to vector<2x16x4xf32>
    %99 = vector.extract_strided_slice %2 {offsets = [0, 2, 0], sizes = [1, 1, 4], strides = [1, 1, 1]} : vector<3x3x4xf32> to vector<1x1x4xf32>
    %100 = vector.shape_cast %99 : vector<1x1x4xf32> to vector<4xf32>
    %c0_85 = arith.constant 0 : index
    %c0_86 = arith.constant 0 : index
    %c0_87 = arith.constant 0 : index
    %101 = vector.load %arg7[%c0_85, %c0_86, %c0_87] : memref<8x16x4xf32, #tpu.memory_space<vmem>>, vector<8x16x4xf32>
    %102 = vector.shape_cast %100 : vector<4xf32> to vector<1x1x4xf32>
    %103 = vector.broadcast %102 : vector<1x1x4xf32> to vector<8x16x4xf32>
    %104 = arith.mulf %95, %103 : vector<8x16x4xf32>
    %105 = arith.addf %101, %104 : vector<8x16x4xf32>
    %c0_88 = arith.constant 0 : index
    %c0_89 = arith.constant 0 : index
    %c0_90 = arith.constant 0 : index
    %106 = vector.load %arg7[%c0_88, %c0_89, %c0_90] : memref<8x16x4xf32, #tpu.memory_space<vmem>>, vector<8x16x4xf32>
    tpu.vector_store %arg7[%c0_88, %c0_89, %c0_90], %105 {strides = array<i32>} : memref<8x16x4xf32, #tpu.memory_space<vmem>>, vector<8x16x4xf32>,
    %107 = vector.extract_strided_slice %2 {offsets = [1, 2, 0], sizes = [1, 1, 4], strides = [1, 1, 1]} : vector<3x3x4xf32> to vector<1x1x4xf32>
    %108 = vector.shape_cast %107 : vector<1x1x4xf32> to vector<4xf32>
    %c0_91 = arith.constant 0 : index
    %c0_92 = arith.constant 0 : index
    %c0_93 = arith.constant 0 : index
    %109 = vector.load %arg7[%c0_91, %c0_92, %c0_93] : memref<8x16x4xf32, #tpu.memory_space<vmem>>, vector<7x16x4xf32>
    %110 = vector.extract_strided_slice %95 {offsets = [1, 0, 0], sizes = [7, 16, 4], strides = [1, 1, 1]} : vector<8x16x4xf32> to vector<7x16x4xf32>
    %111 = vector.shape_cast %108 : vector<4xf32> to vector<1x1x4xf32>
    %112 = vector.broadcast %111 : vector<1x1x4xf32> to vector<7x16x4xf32>
    %113 = arith.mulf %110, %112 : vector<7x16x4xf32>
    %114 = arith.addf %109, %113 : vector<7x16x4xf32>
    %c0_94 = arith.constant 0 : index
    %c0_95 = arith.constant 0 : index
    %c0_96 = arith.constant 0 : index
    %115 = vector.load %arg7[%c0_94, %c0_95, %c0_96] : memref<8x16x4xf32, #tpu.memory_space<vmem>>, vector<7x16x4xf32>
    tpu.vector_store %arg7[%c0_94, %c0_95, %c0_96], %114 {strides = array<i32>} : memref<8x16x4xf32, #tpu.memory_space<vmem>>, vector<7x16x4xf32>,
    %c7_97 = arith.constant 7 : index
    %c0_98 = arith.constant 0 : index
    %c0_99 = arith.constant 0 : index
    %116 = vector.load %arg7[%c7_97, %c0_98, %c0_99] : memref<8x16x4xf32, #tpu.memory_space<vmem>>, vector<1x16x4xf32>
    %117 = vector.extract_strided_slice %98 {offsets = [0, 0, 0], sizes = [1, 16, 4], strides = [1, 1, 1]} : vector<2x16x4xf32> to vector<1x16x4xf32>
    %118 = vector.shape_cast %108 : vector<4xf32> to vector<1x1x4xf32>
    %119 = vector.broadcast %118 : vector<1x1x4xf32> to vector<1x16x4xf32>
    %120 = arith.mulf %117, %119 : vector<1x16x4xf32>
    %121 = arith.addf %116, %120 : vector<1x16x4xf32>
    %c7_100 = arith.constant 7 : index
    %c0_101 = arith.constant 0 : index
    %c0_102 = arith.constant 0 : index
    %122 = vector.load %arg7[%c7_100, %c0_101, %c0_102] : memref<8x16x4xf32, #tpu.memory_space<vmem>>, vector<1x16x4xf32>
    tpu.vector_store %arg7[%c7_100, %c0_101, %c0_102], %121 {strides = array<i32>} : memref<8x16x4xf32, #tpu.memory_space<vmem>>, vector<1x16x4xf32>,
    %123 = vector.extract_strided_slice %2 {offsets = [2, 2, 0], sizes = [1, 1, 4], strides = [1, 1, 1]} : vector<3x3x4xf32> to vector<1x1x4xf32>
    %124 = vector.shape_cast %123 : vector<1x1x4xf32> to vector<4xf32>
    %c0_103 = arith.constant 0 : index
    %c0_104 = arith.constant 0 : index
    %c0_105 = arith.constant 0 : index
    %125 = vector.load %arg7[%c0_103, %c0_104, %c0_105] : memref<8x16x4xf32, #tpu.memory_space<vmem>>, vector<6x16x4xf32>
    %126 = vector.extract_strided_slice %95 {offsets = [2, 0, 0], sizes = [6, 16, 4], strides = [1, 1, 1]} : vector<8x16x4xf32> to vector<6x16x4xf32>
    %127 = vector.shape_cast %124 : vector<4xf32> to vector<1x1x4xf32>
    %128 = vector.broadcast %127 : vector<1x1x4xf32> to vector<6x16x4xf32>
    %129 = arith.mulf %126, %128 : vector<6x16x4xf32>
    %130 = arith.addf %125, %129 : vector<6x16x4xf32>
    %c0_106 = arith.constant 0 : index
    %c0_107 = arith.constant 0 : index
    %c0_108 = arith.constant 0 : index
    %131 = vector.load %arg7[%c0_106, %c0_107, %c0_108] : memref<8x16x4xf32, #tpu.memory_space<vmem>>, vector<6x16x4xf32>
    tpu.vector_store %arg7[%c0_106, %c0_107, %c0_108], %130 {strides = array<i32>} : memref<8x16x4xf32, #tpu.memory_space<vmem>>, vector<6x16x4xf32>,
    %c6_109 = arith.constant 6 : index
    %c0_110 = arith.constant 0 : index
    %c0_111 = arith.constant 0 : index
    %132 = vector.load %arg7[%c6_109, %c0_110, %c0_111] : memref<8x16x4xf32, #tpu.memory_space<vmem>>, vector<2x16x4xf32>
    %133 = vector.shape_cast %124 : vector<4xf32> to vector<1x1x4xf32>
    %134 = vector.broadcast %133 : vector<1x1x4xf32> to vector<2x16x4xf32>
    %135 = arith.mulf %98, %134 : vector<2x16x4xf32>
    %136 = arith.addf %132, %135 : vector<2x16x4xf32>
    %c6_112 = arith.constant 6 : index
    %c0_113 = arith.constant 0 : index
    %c0_114 = arith.constant 0 : index
    %137 = vector.load %arg7[%c6_112, %c0_113, %c0_114] : memref<8x16x4xf32, #tpu.memory_space<vmem>>, vector<2x16x4xf32>
    tpu.vector_store %arg7[%c6_112, %c0_113, %c0_114], %136 {strides = array<i32>} : memref<8x16x4xf32, #tpu.memory_space<vmem>>, vector<2x16x4xf32>,
    %c0_115 = arith.constant 0 : index
    %c0_116 = arith.constant 0 : index
    %c0_117 = arith.constant 0 : index
    %138 = vector.load %arg7[%c0_115, %c0_116, %c0_117] : memref<8x16x4xf32, #tpu.memory_space<vmem>>, vector<8x16x4xf32>
    %139 = arith.truncf %138 : vector<8x16x4xf32> to vector<8x16x4xbf16>
    %140 = vector.shape_cast %139 : vector<8x16x4xbf16> to vector<128x4xbf16>
    %c0_118 = arith.constant 0 : index
    %c0_119 = arith.constant 0 : index
    %141 = vector.load %arg5[%c0_118, %c0_119] : memref<4x128xbf16, #tpu.memory_space<vmem>>, vector<4x128xbf16>
    %cst_120 = arith.constant dense<0.000000e+00> : vector<128x128xf32>
    %142 = tpu.matmul %140, %141, %cst_120 {dimension_numbers = #tpu.dot_dimension_numbers<[1], [0], [0], [1], [0, 0, 1, 1], [], []>} : vector<128x4xbf16>, vector<4x128xbf16>, vector<128x128xf32> -> vector<128x128xf32>
    %143 = vector.shape_cast %142 : vector<128x128xf32> to vector<8x16x128xf32>
    %c0_121 = arith.constant 0 : index
    %c0_122 = arith.constant 0 : index
    %c0_123 = arith.constant 0 : index
    %c0_124 = arith.constant 0 : index
    %144 = vector.load %arg6[%c0_121, %c0_122, %c0_123, %c0_124] : memref<1x8x16x128xf32, #tpu.memory_space<vmem>>, vector<1x8x16x128xf32>
    %145 = vector.shape_cast %144 : vector<1x8x16x128xf32> to vector<8x16x128xf32>
    %146 = vector.shape_cast %143 : vector<8x16x128xf32> to vector<1x8x16x128xf32>
    tpu.vector_store %arg6[%c0_121, %c0_122, %c0_123, %c0_124], %146 {strides = array<i32>} : memref<1x8x16x128xf32, #tpu.memory_space<vmem>>, vector<1x8x16x128xf32>,
    return
  }
  func.func @transform_0(%arg0: i32, %arg1: i32) -> (i32, i32, i32, i32) {
    %c0_i32 = arith.constant 0 : i32
    %c0_i32_0 = arith.constant 0 : i32
    %c0_i32_1 = arith.constant 0 : i32
    return %arg0, %arg1, %c0_i32, %c0_i32_0 : i32, i32, i32, i32
  }
  func.func @transform_1(%arg0: i32, %arg1: i32) -> (i32, i32, i32, i32) {
    %c1_i32 = arith.constant 1 : i32
    %0 = arith.addi %arg1, %c1_i32 : i32
    %c4_i32 = arith.constant 4 : i32
    %1 = arith.muli %0, %c4_i32 : i32
    %c0_i32 = arith.constant 0 : i32
    %c0_i32_0 = arith.constant 0 : i32
    %c0_i32_1 = arith.constant 0 : i32
    return %arg0, %1, %c0_i32, %c0_i32_0 : i32, i32, i32, i32
  }
  func.func @transform_2(%arg0: i32, %arg1: i32) -> (i32, i32, i32) {
    %c0_i32 = arith.constant 0 : i32
    %c0_i32_0 = arith.constant 0 : i32
    %c0_i32_1 = arith.constant 0 : i32
    %c0_i32_2 = arith.constant 0 : i32
    return %c0_i32, %c0_i32_0, %c0_i32_1 : i32, i32, i32
  }
  func.func @transform_3(%arg0: i32, %arg1: i32) -> (i32, i32) {
    %c0_i32 = arith.constant 0 : i32
    %c0_i32_0 = arith.constant 0 : i32
    %c0_i32_1 = arith.constant 0 : i32
    return %c0_i32, %c0_i32_0 : i32, i32
  }
  func.func @transform_4(%arg0: i32, %arg1: i32) -> (i32, i32, i32, i32) {
    %c0_i32 = arith.constant 0 : i32
    %c0_i32_0 = arith.constant 0 : i32
    %c0_i32_1 = arith.constant 0 : i32
    return %arg0, %arg1, %c0_i32, %c0_i32_0 : i32, i32, i32, i32
  }
}

</mosaic_0001>

<bundles_post_ra>
// kernel: tpu_custom_call.1
= control target key start
LH: loop header
LB: loop body
LE: loop exit
PB: predicated region body
PF: predicated region fallthrough
CT: control target
= control target key end

     0   :  { %9 = vsyncpa [#allocation4], 0  ;;  %s3587_s0 = inlined_call_operand.vmem [shape: bf16[2,18,18,4], index: 0, kind: input, shape index: {}]   ;;  %s3588_s1 = inlined_call_operand.vmem [shape: bf16[2,18,18,4], index: 1, kind: input, shape index: {}]   ;;  %s3589_s2 = inlined_call_operand.vmem [shape: f32[3,3,4], index: 2, kind: input, shape index: {}]   ;;  %s3590_s3 = inlined_call_operand.vmem [shape: bf16[4,128], index: 3, kind: input, shape index: {}]   ;;  %s3591_s4 = inlined_call_operand.hbm [shape: f32[2,16,16,128], index: 4, kind: output, shape index: {}]  }
   0x1   :  { %11 = vsyncpa [#allocation4 + $0x1], 0  ;;  %s2239_s15 = smov 0   ;;  %s2241_s16 = smov 0  }
   0x2   :  { %s2243_s17 = smov 0   ;;  %s2245_s18 = smov 0  }
   0x3   :  { %s2247_s19 = smov 0   ;;  %s2249_s20 = smov 0  }
   0x4   :  { %s2251_s21 = smov 0   ;;  %s2253_s22 = smov 0  }
   0x5 LB: > { %s1922_s23 = sadd.s32 4294967295, %s2208_s22   ;;  %s1923_s24 = sadd.s32 4294967294, %s2208_s22   ;;  %s2208_s22 = sphi %s2253_s22, %s17_s22   ;;  %s2204_s21 = sphi %s2251_s21, %s3742_s21   ;;  %s2200_s20 = sphi %s2249_s20, %s3741_s20   ;;  %s2196_s19 = sphi %s2247_s19, %s3740_s19   ;;  %s2192_s18 = sphi %s2245_s18, %s3739_s18   ;;  %s2188_s17 = sphi %s2243_s17, %s3738_s17   ;;  %s2184_s16 = sphi %s2241_s16, %s3737_s16   ;;  %s2180_s15 = sphi %s2239_s15, %s3736_s15  }
   0x6   : > { %s26_s25 = sadd.s32 1, %s2200_s20  ;;  %s29_s26 = sadd.s32 1, %s2204_s21 }
   0x7   : > { %p27_p0 = scmp.ge.s32.totalorder %s26_s25, 2  ;;  %p150_p1 = scmp.ne.s32.totalorder %s2188_s17, %s2184_s16 }
   0x8   : > { %p151_p2 = scmp.eq.s32.totalorder %s1922_s23, 3  ;;  %p156_p5 = scmp.ne.s32.totalorder %s2184_s16, %s2180_s15 }
   0x9   : > { %s3744_s25 = smov (%p27_p0, %s26_s25), 0  ;;  %s3746_s26 = smov (!%p27_p0, %s29_s26), %s2204_s21 }
   0xa   : > { %s136_s27 = ssub.s32 %s2200_s20, %s3744_s25  ;;  %p2290_p3 = por %p151_p2, %p150_p1 }
   0xb   : > { %p31_p4 = scmp.ge.s32.totalorder %s3746_s26, 2  ;;  %p157_p6 = scmp.eq.s32.totalorder %s1923_s24, 3 }
   0xc   : > { %p1928_p7 = scmp.ge.s32.totalorder %s2208_s22, 1  ;;  %p223_p9 = scmp.lt.s32.totalorder %s2208_s22, 5 }
   0xd   : > { %s3748_s26 = smov (%p31_p4, %s3746_s26), 0  ;;  %p2299_p8 = por %p157_p6, %p156_p5 }
   0xe   : > { %s135_s30 = ssub.s32 %s2204_s21, %s3748_s26  ;;  %s140_s5 = sadd.s32 1, %s2188_s17 }
   0xf   : > { %s137_s6 = sor.u32 %s136_s27, %s135_s30  ;;  %p224_p10 = pnand %p1928_p7, %p223_p9 }
  0x10   : > { %p138_p11 = scmp.eq.s32.totalorder %s137_s6, 0 }
  0x11   : > { %227 = sbr.rel (%p224_p10) target bundleno = 495 (0x1ef), region = 36 }
  0x12   : > { %s2308_s7 = scalar_select %p138_p11, %s2188_s17, %s140_s5  }
  0x18   : > { %v1657_v0 = vld [vmem:[%s3590_s3] sm:$0x3]  ;;  %vm1682_vm0 = vcmask 1041408   ;;  %s2314_s10 = sshll.u32 %s2192_s18, 3  ;;  %p277_p12 = scmp.lt.s32.totalorder %s2196_s19, 1  ;;  %vm309_vm1 = vcmask 31744   ;;  %v385_v1 = vlaneseq }
  0x19   : > { %2035 = vmatprep.subr.msk.bf16.mxu0 %vm1682_vm0, %v1657_v0  ;;  %2036 = vmatprep.subr.msk.bf16.mxu1 %vm1682_vm0, %v1657_v0  ;;  %v1684_v2 = vsel %vm1682_vm0, %v1657_v0, 0  ;;  %p279_p13 = scmp.lt.s32.totalorder %s2314_s10, 17  ;;  %v2210_v3 = vmov 0.0   ;;  %s1999_s14 = sadd.s32 8, %s2314_s10  ;;  %v2348_v6 = vld [vmem:[%s3589_s2] sm:$0x7] }
  0x1a   : > { %2016 = vmatpush3.bf16.msra.mxu0 %v1684_v2  ;;  %2034 = vmatpush3.bf16.msra.mxu1 %v1684_v2  ;;  %s2319_s11 = scalar_select %p277_p12, %s2196_s19, 1  ;;  %310 = vst.msk [vmem:[#allocation2] sm:$0xff] %vm309_vm1, %v2210_v3  ;;  %311 = vst.msk [vmem:[#allocation2 + $0x8] sm:$0xff] %vm309_vm1, %v2210_v3  ;;  %v2327_v4 = vshrl.u32 %v385_v1, 7  ;;  %v2376_v27 = vld [vmem:[%s3589_s2 + $0x4] sm:$0x7] }
  0x1b   : > { %312 = vst.msk [vmem:[#allocation2 + $0x10] sm:$0xff] %vm309_vm1, %v2210_v3  ;;  %313 = vst.msk [vmem:[#allocation2 + $0x18] sm:$0xff] %vm309_vm1, %v2210_v3  ;;  %s280_s12 = scalar_select %p279_p13, %s2314_s10, 17  ;;  %v2398_v39 = vld [vmem:[%s3589_s2 + $0x8] sm:$0x7]  ;;  %vm703_vm2 = vcmask 1046528  }
  0x1c   : > { %314 = vst.msk [vmem:[#allocation2 + $0x20] sm:$0xff] %vm309_vm1, %v2210_v3  ;;  %315 = vst.msk [vmem:[#allocation2 + $0x28] sm:$0xff] %vm309_vm1, %v2210_v3  ;;  %s2038_s13 = smul.u32 54, %s2319_s11  ;;  %v387_v5 = vsub.s32 0, %v2327_v4  ;;  %p297_p0 = scmp.lt.s32.totalorder %s1999_s14, 17  ;;  %v653_v44 = vsub.s32 1, %v2327_v4 }
  0x1d   : > { %316 = vst.msk [vmem:[#allocation2 + $0x30] sm:$0xff] %vm309_vm1, %v2210_v3  ;;  %317 = vst.msk [vmem:[#allocation2 + $0x38] sm:$0xff] %vm309_vm1, %v2210_v3  ;;  %s2037_s23 = smul.u32 3, %s280_s12  ;;  %v1182_v59 = vsub.s32 2, %v2327_v4  ;;  %vm1232_vm3 = vcmask 1045504   ;;  %s268_s6 = sand.u32 1, %s2184_s16  }
  0x1e   : > { %318 = vst.msk [vmem:[#allocation2 + $0x40] sm:$0xff] %vm309_vm1, %v2210_v3  ;;  %319 = vst.msk [vmem:[#allocation2 + $0x48] sm:$0xff] %vm309_vm1, %v2210_v3  ;;  %v2358_v7 = vrot.slane %v2348_v6, %v387_v5  ;;  %s3750_s14 = smov (!%p297_p0, %s1999_s14), 17  ;;  %v2387_v36 = vrot.slane %v2376_v27, %v387_v5  ;;  %v2404_v45 = vrot.slane %v2398_v39, %v387_v5  ;;  %s1929_s8 = sshll.u32 %s268_s6, 7 }
  0x1f   : > { %320 = vst.msk [vmem:[#allocation2 + $0x50] sm:$0xff] %vm309_vm1, %v2210_v3  ;;  %321 = vst.msk [vmem:[#allocation2 + $0x58] sm:$0xff] %vm309_vm1, %v2210_v3  ;;  %s283_s30 = sadd.s32 %s2038_s13, %s2037_s23  ;;  %s2039_s10 = smul.u32 3, %s3750_s14  ;;  %v2408_v48 = vrot.slane %v2348_v6, %v653_v44  ;;  %v2430_v5 = vrot.slane %v2398_v39, %v653_v44 }
  0x20   : > { %322 = vst.msk [vmem:[#allocation2 + $0x60] sm:$0xff] %vm309_vm1, %v2210_v3  ;;  %323 = vst.msk [vmem:[#allocation2 + $0x68] sm:$0xff] %vm309_vm1, %v2210_v3  ;;  %s1931_s5 = sshll.u32 %s283_s30, 2  ;;  %s1946_s12 = sshll.u32 %s2196_s19, 5 }
  0x21   : > { %324 = vst.msk [vmem:[#allocation2 + $0x70] sm:$0xff] %vm309_vm1, %v2210_v3  ;;  %325 = vst.msk [vmem:[#allocation2 + $0x78] sm:$0xff] %vm309_vm1, %v2210_v3  ;;  %s2355_s9 = scalar_lea.vmem %s3587_s0, %s1931_s5  ;;  %v369_v15 = vld [vmem:[#allocation2] sm:$0xff]  ;;  %v370_v18 = vld [vmem:[#allocation2 + $0x8] sm:$0xff]  ;;  %s2382_s14 = sadd.s32 %s2039_s10, %s2038_s13  ;;  %v2427_v3 = vrot.slane %v2376_v27, %v653_v44 }
  0x22   : > { %3638 = vst [vmem:[#allocation6_spill] sm:$0xff] %v2358_v7  ;;  %v1959_v8 = vld [vmem:[%s2355_s9] sm:$0xff]   ;;  %v331_v9 = vld [vmem:[%s2355_s9 + $0xc] sm:$0xff]   ;;  %v2000_v10 = vld [vmem:[%s2355_s9 + $0x18] sm:$0xff]   ;;  %s1934_s24 = sshll.u32 %s2382_s14, 2  ;;  %s1957_s10 = sshll.u32 %s2192_s18, 4 }
  0x23   : > { %v1960_v11 = vunpack.c.l.bf16 %v1959_v8  ;;  %v1961_v12 = vunpack.c.h.bf16 %v1959_v8  ;;  %v2363_v13 = vunpack.c.l.bf16 %v2000_v10  ;;  %v2365_v14 = vunpack.c.h.bf16 %v2000_v10  ;;  %v373_v19 = vld [vmem:[#allocation2 + $0x20] sm:$0xff]  ;;  %v374_v20 = vld [vmem:[#allocation2 + $0x28] sm:$0xff]  ;;  %v371_v21 = vld [vmem:[#allocation2 + $0x10] sm:$0xff]  ;;  %3639 = vst [vmem:[#allocation7_spill] sm:$0xff] %v2408_v48  ;;  %s2969_s5 = scalar_lea.vmem %s3588_s1, %s1934_s24  ;;  %s1813_s23 = sadd.s32 %s1957_s10, %s1946_s12 }
  0x24   : > { %v347_v16 = vunpack.c.l.bf16 %v331_v9  ;;  %v348_v17 = vunpack.c.h.bf16 %v331_v9  ;;  %v372_v22 = vld [vmem:[#allocation2 + $0x18] sm:$0xff]  ;;  %v2001_v58 = vld [vmem:[%s2355_s9 + $0x30] sm:$0xff]   ;;  %3640 = vst [vmem:[#allocation8_spill] sm:$0xff] %v2427_v3  ;;  %s1947_s14 = sshll.u32 %s1813_s23, 7  ;;  %s3535_s18 = scalar_lea.sflag [#allocation4], %s268_s6 }
  0x25   : > { %v389_v23 = vmul.f32 %v1960_v11, %v2358_v7  ;;  %v390_v24 = vmul.f32 %v1961_v12, %v2358_v7  ;;  %v393_v25 = vmul.f32 %v2363_v13, %v2358_v7  ;;  %v394_v26 = vmul.f32 %v2365_v14, %v2358_v7  ;;  %v577_v46 = vld [vmem:[%s2355_s9 + $0x8] sm:$0x1]  ;;  %v578_v61 = vld [vmem:[%s2355_s9 + $0xc] sm:$0xff]   ;;  %v580_v1 = vld [vmem:[%s2355_s9 + $0x14] sm:$0x1]  ;;  %s3526_s27 = scalar_lea.hbm %s3591_s4, %s1947_s14  ;;  %s2211_s30 = smov [#allocation3]  }
  0x26   : > { %v391_v28 = vmul.f32 %v2358_v7, %v347_v16  ;;  %v392_v29 = vmul.f32 %v2358_v7, %v348_v17  ;;  %v455_v37 = vmul.f32 %v2387_v36, %v347_v16  ;;  %v456_v38 = vmul.f32 %v2387_v36, %v348_v17  ;;  %v2002_v60 = vld [vmem:[%s2355_s9 + $0x48] sm:$0xff]  }
  0x27   : > { %v405_v30 = vadd.f32 %v389_v23, %v369_v15  ;;  %v406_v31 = vadd.f32 %v390_v24, %v370_v18  ;;  %v409_v32 = vadd.f32 %v393_v25, %v373_v19  ;;  %v410_v33 = vadd.f32 %v394_v26, %v374_v20  ;;  %v377_v15 = vld [vmem:[#allocation2 + $0x40] sm:$0xff]  ;;  %v378_v19 = vld [vmem:[#allocation2 + $0x48] sm:$0xff] }
  0x28   : > { %v407_v34 = vadd.f32 %v391_v28, %v371_v21  ;;  %v408_v35 = vadd.f32 %v392_v29, %v372_v22  ;;  %v601_v47 = vunpack.c.l.bf16 %v577_v46  ;;  %v522_v49 = vmul.f32 %v2363_v13, %v2404_v45  ;;  %v381_v20 = vld [vmem:[#allocation2 + $0x60] sm:$0xff]  ;;  %v583_v22 = vld [vmem:[%s2355_s9 + $0x20] sm:$0x1] }
  0x29   : > { %421 = vst.msk [vmem:[#allocation2] sm:$0xff] %vm309_vm1, %v405_v30  ;;  %422 = vst.msk [vmem:[#allocation2 + $0x8] sm:$0xff] %vm309_vm1, %v406_v31  ;;  %v523_v50 = vmul.f32 %v2365_v14, %v2404_v45  ;;  %v655_v53 = vmul.f32 %v1960_v11, %v2408_v48  ;;  %v656_v54 = vmul.f32 %v1961_v12, %v2408_v48  ;;  %v2424_v2 = vunpack.c.l.bf16 %v2001_v58 }
  0x2a   : > { %425 = vst.msk [vmem:[#allocation2 + $0x20] sm:$0xff] %vm309_vm1, %v409_v32  ;;  %426 = vst.msk [vmem:[#allocation2 + $0x28] sm:$0xff] %vm309_vm1, %v410_v33  ;;  %v657_v55 = vmul.f32 %v2408_v48, %v601_v47  ;;  %v2432_v8 = vunpack.c.h.bf16 %v2001_v58  ;;  %v2434_v9 = vunpack.c.l.bf16 %v2002_v60  ;;  %v602_v4 = vunpack.c.l.bf16 %v578_v61 }
  0x2b   : > { %423 = vst.msk [vmem:[#allocation2 + $0x10] sm:$0xff] %vm309_vm1, %v407_v34  ;;  %424 = vst.msk [vmem:[#allocation2 + $0x18] sm:$0xff] %vm309_vm1, %v408_v35  ;;  %v704_v62 = vrot.slane %v655_v53, 1  ;;  %v705_v63 = vrot.slane %v656_v54, 1  ;;  %v603_v10 = vunpack.c.h.bf16 %v578_v61  ;;  %v2437_v11 = vrot.slane %v2348_v6, %v1182_v59  ;;  %v382_v6 = vld [vmem:[#allocation2 + $0x68] sm:$0xff] }
  0x2c   : > { %v707_v0 = vrot.slane %v657_v55, 1  ;;  %v2439_v12 = vunpack.c.h.bf16 %v2002_v60  ;;  %v604_v16 = vunpack.c.l.bf16 %v580_v1  ;;  %v397_v21 = vmul.f32 %v2424_v2, %v2358_v7  ;;  %v339_v35 = vld [vmem:[%s2355_s9 + $0x3c] sm:$0xff]   ;;  %v2511_v61 = vld [vmem:[%s2355_s9 + $0x4] ss:$12 sps:$4 sm:$0xff]  }
  0x2d   : > { %3641 = vst [vmem:[#allocation9_spill] sm:$0xff] %v2437_v11  ;;  %v706_v17 = vsel %vm703_vm2, %v704_v62, %v705_v63  ;;  %v2447_v23 = vrot.slane %v2376_v27, %v1182_v59  ;;  %v398_v24 = vmul.f32 %v2432_v8, %v2358_v7  ;;  %v401_v25 = vmul.f32 %v2434_v9, %v2358_v7  ;;  %v1106_v62 = vld [vmem:[%s2355_s9 + $0x8] sm:$0x1] }
  0x2e   : > { %v708_v18 = vsel %vm703_vm2, %v705_v63, %v707_v0  ;;  %v402_v26 = vmul.f32 %v2439_v12, %v2358_v7  ;;  %v810_v30 = vmul.f32 %v2427_v3, %v602_v4  ;;  %v811_v31 = vmul.f32 %v2427_v3, %v603_v10 }
  0x2f   : > { %v812_v32 = vmul.f32 %v2427_v3, %v604_v16  ;;  %v413_v27 = vadd.f32 %v397_v21, %v377_v15  ;;  %v2470_v44 = vmul.f32 %v2408_v48, %v602_v4  ;;  %v2473_v46 = vmul.f32 %v2408_v48, %v603_v10  ;;  %v1107_v10 = vld [vmem:[%s2355_s9 + $0xc] sm:$0xe] }
  0x30   : > { %v437_v40 = vld [vmem:[#allocation2] sm:$0xff]  ;;  %v438_v41 = vld [vmem:[#allocation2 + $0x8] sm:$0xff]  ;;  %v2476_v47 = vmul.f32 %v2408_v48, %v604_v16  ;;  %v2491_v53 = vmul.f32 %v2365_v14, %v2387_v36  ;;  %v964_v54 = vmul.f32 %v2363_v13, %v2430_v5  ;;  %v965_v55 = vmul.f32 %v2365_v14, %v2430_v5 }
  0x31   : > { %v469_v42 = vadd.f32 %v455_v37, %v437_v40  ;;  %v470_v43 = vadd.f32 %v456_v38, %v438_v41  ;;  %v414_v37 = vadd.f32 %v398_v24, %v378_v19  ;;  %v417_v38 = vadd.f32 %v401_v25, %v381_v20  ;;  %429 = vst.msk [vmem:[#allocation2 + $0x40] sm:$0xff] %vm309_vm1, %v413_v27  ;;  %v1109_v19 = vld [vmem:[%s2355_s9 + $0x14] sm:$0x1]  ;;  %v1110_v20 = vld [vmem:[%s2355_s9 + $0x18] sm:$0xe] }
  0x32   : > { %v2461_v40 = vmul.f32 %v2363_v13, %v2387_v36  ;;  %v2463_v41 = vunpack.c.l.bf16 %v583_v22  ;;  %v2502_v58 = vmul.f32 %v2365_v14, %v2408_v48  ;;  %v1000_v22 = vrot.slane %v964_v54, 1  ;;  %v1112_v24 = vld [vmem:[%s2355_s9 + $0x20] sm:$0x1] }
  0x33   : > { %483 = vst.msk [vmem:[#allocation2] sm:$0xff] %vm309_vm1, %v469_v42  ;;  %484 = vst.msk [vmem:[#allocation2 + $0x8] sm:$0xff] %vm309_vm1, %v470_v43  ;;  %v2466_v42 = vrot.slane %v2398_v39, %v1182_v59  ;;  %v418_v43 = vadd.f32 %v402_v26, %v382_v6  ;;  %v852_v39 = vrot.slane %v810_v30, 1  ;;  %v1001_v6 = vrot.slane %v965_v55, 1 }
  0x34   : > { %430 = vst.msk [vmem:[#allocation2 + $0x48] sm:$0xff] %vm309_vm1, %v414_v37  ;;  %433 = vst.msk [vmem:[#allocation2 + $0x60] sm:$0xff] %vm309_vm1, %v417_v38  ;;  %v2506_v59 = vmul.f32 %v2408_v48, %v2463_v41  ;;  %v966_v60 = vmul.f32 %v2430_v5, %v2463_v41  ;;  %v1129_v25 = vunpack.c.l.bf16 %v2511_v61  ;;  %v1130_v26 = vunpack.c.l.bf16 %v1106_v62  ;;  %v2531_v38 = vld [vmem:[%s2355_s9 + $0x1c] ss:$24 sps:$4 sm:$0xff]  }
  0x35   : > { %434 = vst.msk [vmem:[#allocation2 + $0x68] sm:$0xff] %vm309_vm1, %v418_v43  ;;  %v1132_v27 = vunpack.c.h.bf16 %v2511_v61  ;;  %v1133_v43 = vunpack.c.l.bf16 %v1109_v19  ;;  %v2535_v54 = vunpack.c.l.bf16 %v1110_v20  ;;  %v2538_v55 = vunpack.c.l.bf16 %v2531_v38 }
  0x36   : > { %3644 = vst [vmem:[#allocation12_spill] sm:$0xff] %v2506_v59  ;;  %v1185_v62 = vmul.f32 %v2437_v11, %v1129_v25 }
  0x37   : > { %v2568_v20 = vmul.f32 %v2437_v11, %v1132_v27 }
  0x3a   : > { %v506_v51 = vld [vmem:[#allocation2] sm:$0xff]  ;;  %v507_v52 = vld [vmem:[#allocation2 + $0x8] sm:$0xff] }
  0x3b   : > { %v534_v56 = vadd.f32 %v522_v49, %v506_v51  ;;  %v535_v57 = vadd.f32 %v523_v50, %v507_v52  ;;  %v2480_v49 = vmul.f32 %v2363_v13, %v2408_v48  ;;  %v853_v50 = vrot.slane %v811_v31, 1 }
  0x3c   : > { %v855_v51 = vrot.slane %v812_v32, 1  ;;  %v2486_v52 = vunpack.c.l.bf16 %v339_v35  ;;  %v1003_v31 = vrot.slane %v966_v60, 1  ;;  %v1131_v32 = vunpack.c.l.bf16 %v1107_v10 }
  0x3d   : > { %546 = vst.msk [vmem:[#allocation2] sm:$0xff] %vm309_vm1, %v534_v56  ;;  %547 = vst.msk [vmem:[#allocation2 + $0x8] sm:$0xff] %vm309_vm1, %v535_v57  ;;  %v1104_v56 = vld [vmem:[%s2355_s9] sm:$0xe]  ;;  %v2498_v57 = vunpack.c.h.bf16 %v339_v35  ;;  %v2547_v60 = vunpack.c.l.bf16 %v1112_v24  ;;  %v2555_v10 = vmul.f32 %v2365_v14, %v2427_v3  ;;  %v2575_v14 = vmul.f32 %v2437_v11, %v2535_v54 }
  0x3e   : > { %3642 = vst [vmem:[#allocation10_spill] sm:$0xff] %v2486_v52  ;;  %v463_v63 = vmul.f32 %v2387_v36, %v2486_v52  ;;  %v1128_v21 = vunpack.c.l.bf16 %v1104_v56  ;;  %v2543_v56 = vmul.f32 %v2363_v13, %v2427_v3  ;;  %v2559_v13 = vmul.f32 %v2427_v3, %v2463_v41 }
  0x3f   : > { %3643 = vst [vmem:[#allocation11_spill] sm:$0xff] %v2498_v57  ;;  %v464_v15 = vmul.f32 %v2387_v36, %v2498_v57  ;;  %v2565_v19 = vmul.f32 %v2437_v11, %v1131_v32  ;;  %3647 = vst [vmem:[#allocation15_spill] sm:$0xff] %v2575_v14  ;;  %v2579_v41 = vmul.f32 %v2437_v11, %v2538_v55 }
  0x40   : > { %v1184_v61 = vmul.f32 %v2437_v11, %v1128_v21  ;;  %v2571_v21 = vmul.f32 %v2437_v11, %v1133_v43  ;;  %v2587_v24 = vmul.f32 %v2437_v11, %v2547_v60 }
  0x41   : > { %3645 = vst [vmem:[#allocation13_spill] sm:$0xff] %v2565_v19  ;;  %3648 = vst [vmem:[#allocation16_spill] sm:$0xff] %v2579_v41  ;;  %v439_v19 = vld [vmem:[#allocation2 + $0x10] sm:$0xff] }
  0x42   : > { %3646 = vst [vmem:[#allocation14_spill] sm:$0xff] %v2571_v21  ;;  %3650 = vst [vmem:[#allocation18_spill] sm:$0xff] %v2587_v24  ;;  %v1233_v25 = vrot.slane %v1184_v61, 2  ;;  %v668_v61 = vmul.f32 %v2432_v8, %v2408_v48 }
  0x44   : > { %v635_v28 = vld [vmem:[#allocation2] sm:$0xff]  ;;  %v636_v29 = vld [vmem:[#allocation2 + $0x8] sm:$0xff] }
  0x45   : > { %v760_v33 = vadd.f32 %v706_v17, %v635_v28  ;;  %v761_v34 = vadd.f32 %v708_v18, %v636_v29  ;;  %v854_v17 = vsel %vm703_vm2, %v852_v39, %v853_v50  ;;  %v856_v18 = vsel %vm703_vm2, %v853_v50, %v855_v51  ;;  %v445_v28 = vld [vmem:[#allocation2 + $0x40] sm:$0xff] }
  0x47   : > { %776 = vst.msk [vmem:[#allocation2] sm:$0xff] %vm309_vm1, %v760_v33  ;;  %777 = vst.msk [vmem:[#allocation2 + $0x8] sm:$0xff] %vm309_vm1, %v761_v34  ;;  %v446_v33 = vld [vmem:[#allocation2 + $0x48] sm:$0xff]  ;;  %v477_v34 = vadd.f32 %v463_v63, %v445_v28  ;;  %v531_v28 = vmul.f32 %v2439_v12, %v2404_v45 }
  0x48   : > { %v478_v39 = vadd.f32 %v464_v15, %v446_v33  ;;  %v589_v63 = vld [vmem:[%s2355_s9 + $0x38] sm:$0x1]  ;;  %v1002_v15 = vsel %vm703_vm2, %v1000_v22, %v1001_v6  ;;  %v530_v22 = vmul.f32 %v2434_v9, %v2404_v45  ;;  %v1341_v33 = vmul.f32 %v2447_v23, %v1133_v43 }
  0x49   : > { %491 = vst.msk [vmem:[#allocation2 + $0x40] sm:$0xff] %vm309_vm1, %v477_v34 }
  0x4a   : > { %492 = vst.msk [vmem:[#allocation2 + $0x48] sm:$0xff] %vm309_vm1, %v478_v39  ;;  %v667_v39 = vmul.f32 %v2424_v2, %v2408_v48  ;;  %v1384_v59 = vrot.slane %v1341_v33, 2  ;;  %v590_v33 = vld [vmem:[%s2355_s9 + $0x3c] sm:$0xff]  }
  0x4e   : > { %v792_v29 = vld [vmem:[#allocation2] sm:$0xff]  ;;  %v793_v30 = vld [vmem:[#allocation2 + $0x8] sm:$0xff] }
  0x4f   : > { %v901_v35 = vadd.f32 %v854_v17, %v792_v29  ;;  %v902_v37 = vadd.f32 %v856_v18, %v793_v30  ;;  %v1186_v17 = vmul.f32 %v2437_v11, %v1130_v26  ;;  %v1004_v18 = vsel %vm703_vm2, %v1001_v6, %v1003_v31 }
  0x50   : > { %v2583_v6 = vunpack.c.l.bf16 %v589_v63  ;;  %v1234_v26 = vrot.slane %v1185_v62, 2  ;;  %v1339_v30 = vmul.f32 %v2447_v23, %v1131_v32  ;;  %v1340_v31 = vmul.f32 %v2447_v23, %v1132_v27 }
  0x51   : > { %915 = vst.msk [vmem:[#allocation2] sm:$0xff] %vm309_vm1, %v901_v35  ;;  %916 = vst.msk [vmem:[#allocation2 + $0x8] sm:$0xff] %vm309_vm1, %v902_v37  ;;  %v1236_v29 = vrot.slane %v1186_v17, 2  ;;  %v514_v37 = vld [vmem:[#allocation2 + $0x40] sm:$0xff]  ;;  %v1493_v32 = vmul.f32 %v2466_v42, %v2535_v54  ;;  %v2604_v27 = vmul.f32 %v2466_v42, %v2538_v55  ;;  %v515_v43 = vld [vmem:[#allocation2 + $0x48] sm:$0xff] }
  0x52   : > { %3649 = vst [vmem:[#allocation17_spill] sm:$0xff] %v2583_v6  ;;  %v542_v17 = vadd.f32 %v530_v22, %v514_v37  ;;  %v669_v51 = vmul.f32 %v2408_v48, %v2583_v6  ;;  %v543_v50 = vadd.f32 %v531_v28, %v515_v43  ;;  %v1235_v4 = vsel %vm1232_vm3, %v1233_v25, %v1234_v26  ;;  %v440_v37 = vld [vmem:[#allocation2 + $0x18] sm:$0xff] }
  0x53   : > { %v1381_v0 = vrot.slane %v1339_v30, 2  ;;  %v1382_v1 = vrot.slane %v1340_v31, 2  ;;  %v724_v22 = vrot.slane %v667_v39, 1  ;;  %v725_v25 = vrot.slane %v668_v61, 1  ;;  %v1120_v6 = vld [vmem:[%s2355_s9 + $0x40] ss:$12 sps:$4 sm:$0xff]  }
  0x54   : > { %554 = vst.msk [vmem:[#allocation2 + $0x40] sm:$0xff] %vm309_vm1, %v542_v17  ;;  %555 = vst.msk [vmem:[#allocation2 + $0x48] sm:$0xff] %vm309_vm1, %v543_v50  ;;  %v1495_v28 = vmul.f32 %v2466_v42, %v2547_v60  ;;  %v1529_v30 = vrot.slane %v1493_v32, 2  ;;  %v1530_v31 = vrot.slane %v2604_v27, 2  ;;  %v592_v50 = vld [vmem:[%s2355_s9 + $0x44] sm:$0x1]  ;;  %v471_v39 = vadd.f32 %v2461_v40, %v439_v19 }
  0x55   : > { %v2630_v61 = vmul.f32 %v2447_v23, %v2538_v55  ;;  %v2643_v32 = vunpack.c.l.bf16 %v590_v33  ;;  %v2645_v27 = vunpack.c.h.bf16 %v590_v33  ;;  %v726_v40 = vsel %vm703_vm2, %v724_v22, %v725_v25 }
  0x56   : > { %v472_v55 = vadd.f32 %v2491_v53, %v440_v37  ;;  %485 = vst.msk [vmem:[#allocation2 + $0x10] sm:$0xff] %vm309_vm1, %v471_v39  ;;  %v1532_v19 = vrot.slane %v1495_v28, 2  ;;  %v857_v53 = vrot.slane %v2543_v56, 1  ;;  %v3594_v39 = vrot.slane %v2555_v10, 1 }
  0x57   : > { %3652 = vst [vmem:[#allocation20_spill] sm:$0xff] %v2643_v32  ;;  %3653 = vst [vmem:[#allocation21_spill] sm:$0xff] %v2645_v27  ;;  %v822_v17 = vmul.f32 %v2427_v3, %v2643_v32  ;;  %v823_v22 = vmul.f32 %v2427_v3, %v2645_v27 }
  0x58   : > { %v948_v62 = vld [vmem:[#allocation2] sm:$0xff]  ;;  %v949_v63 = vld [vmem:[#allocation2 + $0x8] sm:$0xff]  ;;  %486 = vst.msk [vmem:[#allocation2 + $0x18] sm:$0xff] %vm309_vm1, %v472_v55  ;;  %v2673_v55 = vsel %vm1232_vm3, %v1530_v31, %v1532_v19 }
  0x59   : > { %v1042_v34 = vadd.f32 %v1002_v15, %v948_v62  ;;  %v1043_v35 = vadd.f32 %v1004_v18, %v949_v63  ;;  %v1237_v15 = vsel %vm1232_vm3, %v1234_v26, %v1236_v29  ;;  %v2624_v29 = vmul.f32 %v2447_v23, %v2535_v54  ;;  %v335_v54 = vld [vmem:[%s2355_s9 + $0x24] sm:$0xff]  }
  0x5a   : > { %v2637_v62 = vsel %vm1232_vm3, %v1381_v0, %v1382_v1  ;;  %v2640_v63 = vsel %vm1232_vm3, %v1382_v1, %v1384_v59  ;;  %v2653_v0 = vunpack.c.l.bf16 %v592_v50  ;;  %v595_v1 = vld [vmem:[%s2355_s9 + $0x50] sm:$0x1]  ;;  %v2661_v33 = vunpack.c.l.bf16 %v335_v54 }
  0x5b   : > { %1054 = vst.msk [vmem:[#allocation2] sm:$0xff] %vm309_vm1, %v1042_v34  ;;  %1055 = vst.msk [vmem:[#allocation2 + $0x8] sm:$0xff] %vm309_vm1, %v1043_v35  ;;  %v727_v34 = vrot.slane %v669_v51, 1  ;;  %v2634_v51 = vmul.f32 %v2447_v23, %v2547_v60  ;;  %v2651_v60 = vsel %vm1232_vm3, %v1529_v30, %v1530_v31  ;;  %v643_v43 = vld [vmem:[#allocation2 + $0x40] sm:$0xff]  ;;  %v644_v37 = vld [vmem:[#allocation2 + $0x48] sm:$0xff]  ;;  %v619_v56 = vunpack.c.l.bf16 %v595_v1 }
  0x5c   : > { %3654 = vst [vmem:[#allocation22_spill] sm:$0xff] %v2653_v0  ;;  %v768_v50 = vadd.f32 %v726_v40, %v643_v43  ;;  %v524_v16 = vmul.f32 %v2404_v45, %v2661_v33  ;;  %v2677_v40 = vmul.f32 %v2434_v9, %v2408_v48  ;;  %v873_v31 = vrot.slane %v823_v22, 1 }
  0x5d   : > { %3651 = vst [vmem:[#allocation19_spill] sm:$0xff] %v2634_v51  ;;  %v728_v59 = vsel %vm703_vm2, %v725_v25, %v727_v34  ;;  %v824_v25 = vmul.f32 %v2427_v3, %v2653_v0  ;;  %v2667_v34 = vunpack.c.h.bf16 %v335_v54  ;;  %v2683_v54 = vsel %vm703_vm2, %v857_v53, %v3594_v39  ;;  %v508_v43 = vld [vmem:[#allocation2 + $0x10] sm:$0xff]  ;;  %v1116_v53 = vld [vmem:[%s2355_s9 + $0x30] sm:$0xe] }
  0x5e   : > { %v769_v35 = vadd.f32 %v728_v59, %v644_v37  ;;  %3655 = vst [vmem:[#allocation23_spill] sm:$0xff] %v2677_v40  ;;  %784 = vst.msk [vmem:[#allocation2 + $0x40] sm:$0xff] %vm309_vm1, %v768_v50  ;;  %v399_v59 = vmul.f32 %v2358_v7, %v2486_v52  ;;  %v400_v1 = vmul.f32 %v2358_v7, %v2498_v57  ;;  %v1121_v7 = vld [vmem:[%s2355_s9 + $0x44] sm:$0x1] }
  0x5f   : > { %v525_v19 = vmul.f32 %v2404_v45, %v2667_v34  ;;  %v2712_v22 = vmul.f32 %v2408_v48, %v2645_v27  ;;  %v2720_v37 = vmul.f32 %v2408_v48, %v619_v56  ;;  %v509_v39 = vld [vmem:[#allocation2 + $0x18] sm:$0xff]  ;;  %v825_v50 = vmul.f32 %v2434_v9, %v2427_v3 }
  0x60   : > { %785 = vst.msk [vmem:[#allocation2 + $0x48] sm:$0xff] %vm309_vm1, %v769_v35  ;;  %v2704_v35 = vmul.f32 %v2439_v12, %v2387_v36  ;;  %v380_v27 = vld [vmem:[#allocation2 + $0x58] sm:$0xff]  ;;  %v826_v52 = vmul.f32 %v2439_v12, %v2427_v3  ;;  %v978_v14 = vmul.f32 %v2430_v5, %v619_v56 }
  0x61   : > { %v537_v57 = vadd.f32 %v525_v19, %v509_v39  ;;  %v2741_v39 = vunpack.c.l.bf16 %v1116_v53 }
  0x62   : > { %v1164_v30 = vld [vmem:[#allocation2] sm:$0xff]  ;;  %v1165_v28 = vld [vmem:[#allocation2 + $0x8] sm:$0xff] }
  0x63   : > { %v1289_v26 = vadd.f32 %v1235_v4, %v1164_v30  ;;  %v1290_v18 = vadd.f32 %v1237_v15, %v1165_v28  ;;  %v2689_v4 = vmul.f32 %v2439_v12, %v2408_v48  ;;  %v872_v15 = vrot.slane %v822_v17, 1  ;;  %3657 = vst [vmem:[#allocation25_spill] sm:$0xff] %v2741_v39  ;;  %549 = vst.msk [vmem:[#allocation2 + $0x18] sm:$0xff] %vm309_vm1, %v537_v57  ;;  %v1122_v57 = vld [vmem:[%s2355_s9 + $0x48] sm:$0xe] }
  0x64   : > { %v2708_v17 = vmul.f32 %v2408_v48, %v2643_v32  ;;  %v536_v30 = vadd.f32 %v524_v16, %v508_v43  ;;  %v2717_v28 = vmul.f32 %v2408_v48, %v2653_v0  ;;  %v379_v32 = vld [vmem:[#allocation2 + $0x50] sm:$0xff]  ;;  %v977_v0 = vmul.f32 %v2439_v12, %v2430_v5  ;;  %v1118_v48 = vld [vmem:[%s2355_s9 + $0x38] sm:$0x1]  ;;  %v1119_v16 = vld [vmem:[%s2355_s9 + $0x3c] sm:$0xe] }
  0x65   : > { %1305 = vst.msk [vmem:[#allocation2] sm:$0xff] %vm309_vm1, %v1289_v26  ;;  %1306 = vst.msk [vmem:[#allocation2 + $0x8] sm:$0xff] %vm309_vm1, %v1290_v18  ;;  %v2700_v18 = vmul.f32 %v2434_v9, %v2387_v36  ;;  %v875_v26 = vrot.slane %v824_v25, 1  ;;  %v976_v25 = vmul.f32 %v2434_v9, %v2430_v5  ;;  %v874_v43 = vsel %vm703_vm2, %v872_v15, %v873_v31  ;;  %v800_v41 = vld [vmem:[#allocation2 + $0x40] sm:$0xff] }
  0x66   : > { %3656 = vst [vmem:[#allocation24_spill] sm:$0xff] %v2689_v4  ;;  %548 = vst.msk [vmem:[#allocation2 + $0x10] sm:$0xff] %vm309_vm1, %v536_v30  ;;  %v827_v15 = vmul.f32 %v2427_v3, %v619_v56  ;;  %v415_v19 = vadd.f32 %v399_v59, %v379_v32  ;;  %v416_v9 = vadd.f32 %v400_v1, %v380_v27  ;;  %v2747_v40 = vunpack.c.l.bf16 %v1118_v48  ;;  %v1124_v27 = vld [vmem:[%s2355_s9 + $0x50] sm:$0x1] }
  0x67   : > { %v876_v24 = vsel %vm703_vm2, %v873_v31, %v875_v26  ;;  %v801_v12 = vld [vmem:[#allocation2 + $0x48] sm:$0xff]  ;;  %v909_v21 = vadd.f32 %v874_v43, %v800_v41  ;;  %v1020_v31 = vrot.slane %v976_v25, 1  ;;  %v2745_v26 = vunpack.c.h.bf16 %v2531_v38 }
  0x68   : > { %3659 = vst [vmem:[#allocation27_spill] sm:$0xff] %v2747_v40  ;;  %v910_v53 = vadd.f32 %v876_v24, %v801_v12  ;;  %v1021_v4 = vrot.slane %v977_v0, 1  ;;  %431 = vst.msk [vmem:[#allocation2 + $0x50] sm:$0xff] %vm309_vm1, %v415_v19  ;;  %v1023_v41 = vrot.slane %v978_v14, 1  ;;  %v2755_v32 = vunpack.c.l.bf16 %v1119_v16 }
  0x69   : > { %3658 = vst [vmem:[#allocation26_spill] sm:$0xff] %v2745_v26  ;;  %432 = vst.msk [vmem:[#allocation2 + $0x58] sm:$0xff] %vm309_vm1, %v416_v9  ;;  %v2757_v38 = vunpack.c.l.bf16 %v1120_v6  ;;  %v3662_v48 = vrot.slane %v2473_v46, 1  ;;  %v878_v14 = vrot.slane %v826_v52, 1  ;;  %v2770_v0 = vunpack.c.l.bf16 %v1122_v57 }
  0x6a   : > { %923 = vst.msk [vmem:[#allocation2 + $0x40] sm:$0xff] %vm309_vm1, %v909_v21  ;;  %3660 = vst [vmem:[#allocation28_spill] sm:$0xff] %v2755_v32  ;;  %v877_v21 = vrot.slane %v825_v50, 1  ;;  %v2774_v59 = vmul.f32 %v2437_v11, %v2741_v39  ;;  %v2787_v52 = vmul.f32 %v2437_v11, %v2747_v40  ;;  %v1024_v46 = vsel %vm703_vm2, %v1021_v4, %v1023_v41  ;;  %v638_v9 = vld [vmem:[#allocation2 + $0x18] sm:$0xff] }
  0x6b   : > { %3661 = vst [vmem:[#allocation29_spill] sm:$0xff] %v2757_v38  ;;  %924 = vst.msk [vmem:[#allocation2 + $0x48] sm:$0xff] %vm309_vm1, %v910_v53  ;;  %v2798_v19 = vunpack.c.h.bf16 %v1120_v6  ;;  %v2804_v12 = vmul.f32 %v2437_v11, %v2755_v32  ;;  %v584_v41 = vld [vmem:[%s2355_s9 + $0x24] sm:$0xff]  }
  0x6c   : > { %v1321_v30 = vld [vmem:[#allocation2] sm:$0xff]  ;;  %v1322_v51 = vld [vmem:[#allocation2 + $0x8] sm:$0xff]  ;;  %v2790_v16 = vsel %vm703_vm2, %v877_v21, %v878_v14  ;;  %v1256_v21 = vrot.slane %v2787_v52, 2 }
  0x6d   : > { %v1430_v56 = vadd.f32 %v2637_v62, %v1321_v30  ;;  %v1431_v3 = vadd.f32 %v2640_v63, %v1322_v51  ;;  %v3663_v62 = vrot.slane %v2470_v44, 1  ;;  %v2767_v51 = vunpack.c.l.bf16 %v1121_v7  ;;  %v637_v1 = vld [vmem:[#allocation2 + $0x10] sm:$0xff] }
  0x6e   : > { %v880_v63 = vrot.slane %v827_v15, 1  ;;  %v2778_v44 = vmul.f32 %v2437_v11, %v2745_v26  ;;  %v3666_v7 = vmov %v3662_v48  ;;  %v2800_v30 = vunpack.c.l.bf16 %v1124_v27  ;;  %v343_v27 = vld [vmem:[%s2355_s9 + $0x54] sm:$0xff]  }
  0x6f   : > { %v711_v24 = vsel %vm703_vm2, %v3663_v62, %v3662_v48  ;;  %1444 = vst.msk [vmem:[#allocation2] sm:$0xff] %vm309_vm1, %v1430_v56  ;;  %1445 = vst.msk [vmem:[#allocation2 + $0x8] sm:$0xff] %vm309_vm1, %v1431_v3  ;;  %v3665_v3 = vrot.slane %v2476_v47, 1  ;;  %v1022_v47 = vsel %vm703_vm2, %v1020_v31, %v1021_v4  ;;  %v2808_v56 = vmul.f32 %v2437_v11, %v2757_v38  ;;  %v447_v48 = vld [vmem:[#allocation2 + $0x50] sm:$0xff] }
  0x70   : > { %3664 = vst [vmem:[#allocation30_spill] sm:$0xff] %v2767_v51  ;;  %v762_v25 = vadd.f32 %v711_v24, %v637_v1  ;;  %v2793_v43 = vsel %vm703_vm2, %v878_v14, %v880_v63  ;;  %v2813_v6 = vmul.f32 %v2437_v11, %v2767_v51  ;;  %v2817_v4 = vmul.f32 %v2437_v11, %v2770_v0  ;;  %v448_v62 = vld [vmem:[#allocation2 + $0x58] sm:$0xff] }
  0x71   : > { %v713_v50 = vsel %vm703_vm2, %v3666_v7, %v3665_v3  ;;  %v1253_v31 = vrot.slane %v2774_v59, 2  ;;  %v1254_v57 = vrot.slane %v2778_v44, 2  ;;  %v956_v24 = vld [vmem:[#allocation2 + $0x40] sm:$0xff]  ;;  %v2825_v14 = vmul.f32 %v2447_v23, %v2755_v32  ;;  %v586_v63 = vld [vmem:[%s2355_s9 + $0x2c] sm:$0x1] }
  0x72   : > { %v763_v53 = vadd.f32 %v713_v50, %v638_v9  ;;  %778 = vst.msk [vmem:[#allocation2 + $0x10] sm:$0xff] %vm309_vm1, %v762_v25  ;;  %3667 = vst [vmem:[#allocation31_spill] sm:$0xff] %v2817_v4  ;;  %v479_v1 = vadd.f32 %v2700_v18, %v447_v48  ;;  %v480_v59 = vadd.f32 %v2704_v35, %v448_v62  ;;  %v957_v7 = vld [vmem:[#allocation2 + $0x48] sm:$0xff]  ;;  %v860_v9 = vrot.slane %v2559_v13, 1 }
  0x73   : > { %v1050_v50 = vadd.f32 %v1022_v47, %v956_v24  ;;  %v2834_v25 = vmul.f32 %v2447_v23, %v2757_v38  ;;  %v2838_v52 = vmul.f32 %v2447_v23, %v2767_v51  ;;  %v1051_v48 = vadd.f32 %v1024_v46, %v957_v7  ;;  %v442_v46 = vld [vmem:[#allocation2 + $0x28] sm:$0xff] }
  0x74   : > { %779 = vst.msk [vmem:[#allocation2 + $0x18] sm:$0xff] %vm309_vm1, %v763_v53  ;;  %v2843_v35 = vunpack.c.l.bf16 %v584_v41  ;;  %493 = vst.msk [vmem:[#allocation2 + $0x50] sm:$0xff] %vm309_vm1, %v479_v1  ;;  %v2850_v47 = vmul.f32 %v2466_v42, %v2770_v0  ;;  %v2852_v62 = vunpack.c.h.bf16 %v584_v41  ;;  %v2854_v13 = vunpack.c.l.bf16 %v586_v63 }
  0x75   : > { %494 = vst.msk [vmem:[#allocation2 + $0x58] sm:$0xff] %vm309_vm1, %v480_v59  ;;  %1062 = vst.msk [vmem:[#allocation2 + $0x40] sm:$0xff] %vm309_vm1, %v1050_v50  ;;  %v2863_v1 = vunpack.c.h.bf16 %v343_v27  ;;  %v459_v41 = vmul.f32 %v2387_v36, %v2661_v33  ;;  %v460_v63 = vmul.f32 %v2387_v36, %v2667_v34  ;;  %v2892_v51 = vmul.f32 %v2466_v42, %v2798_v19 }
  0x76   : > { %v1477_v3 = vld [vmem:[#allocation2] sm:$0xff]  ;;  %v1478_v44 = vld [vmem:[#allocation2 + $0x8] sm:$0xff]  ;;  %3668 = vst [vmem:[#allocation32_spill] sm:$0xff] %v2852_v62  ;;  %3669 = vst [vmem:[#allocation33_spill] sm:$0xff] %v2854_v13  ;;  %v967_v24 = vmul.f32 %v2430_v5, %v2843_v35  ;;  %v968_v7 = vmul.f32 %v2430_v5, %v2852_v62 }
  0x77   : > { %v1571_v53 = vadd.f32 %v2651_v60, %v1477_v3  ;;  %v1572_v18 = vadd.f32 %v2673_v55, %v1478_v44  ;;  %v2856_v60 = vunpack.c.l.bf16 %v343_v27  ;;  %v441_v55 = vld [vmem:[#allocation2 + $0x20] sm:$0xff]  ;;  %1063 = vst.msk [vmem:[#allocation2 + $0x48] sm:$0xff] %vm309_vm1, %v1051_v48  ;;  %3671 = vst [vmem:[#allocation35_spill] sm:$0xff] %v2863_v1  ;;  %v3672_v3 = vrot.slane %v2555_v10, 1 }
  0x78   : > { %v3673_v27 = vrot.slane %v2502_v58, 1  ;;  %v533_v10 = vmul.f32 %v2404_v45, %v2863_v1  ;;  %v473_v15 = vadd.f32 %v459_v41, %v441_v55  ;;  %v2902_v55 = vmul.f32 %v2437_v11, %v2800_v30 }
  0x79   : > { %3670 = vst [vmem:[#allocation34_spill] sm:$0xff] %v2856_v60  ;;  %1583 = vst.msk [vmem:[#allocation2] sm:$0xff] %vm309_vm1, %v1571_v53  ;;  %v794_v59 = vld [vmem:[#allocation2 + $0x10] sm:$0xff]  ;;  %v861_v44 = vsel %vm703_vm2, %v3672_v3, %v860_v9  ;;  %v532_v50 = vmul.f32 %v2404_v45, %v2856_v60  ;;  %v3674_v53 = vrot.slane %v2480_v49, 1  ;;  %v474_v9 = vadd.f32 %v460_v63, %v442_v46 }
  0x7a   : > { %1584 = vst.msk [vmem:[#allocation2 + $0x8] sm:$0xff] %vm309_vm1, %v1572_v18  ;;  %v903_v48 = vadd.f32 %v2683_v54, %v794_v59  ;;  %v2888_v3 = vmul.f32 %v2437_v11, %v2798_v19  ;;  %v2896_v49 = vmul.f32 %v2466_v42, %v2800_v30  ;;  %v969_v54 = vmul.f32 %v2430_v5, %v2854_v13 }
  0x7b   : > { %v2881_v18 = vsel %vm703_vm2, %v3674_v53, %v3673_v27  ;;  %v795_v27 = vld [vmem:[#allocation2 + $0x18] sm:$0xff]  ;;  %3676 = vst [vmem:[#allocation37_spill] sm:$0xff] %v2902_v55  ;;  %v1255_v46 = vsel %vm1232_vm3, %v1253_v31, %v1254_v57  ;;  %v1257_v41 = vsel %vm1232_vm3, %v1254_v57, %v1256_v21  ;;  %487 = vst.msk [vmem:[#allocation2 + $0x20] sm:$0xff] %vm309_vm1, %v473_v15  ;;  %v1401_v59 = vrot.slane %v2825_v14, 2  ;;  %v516_v40 = vld [vmem:[#allocation2 + $0x50] sm:$0xff] }
  0x7c   : > { %3675 = vst [vmem:[#allocation36_spill] sm:$0xff] %v2888_v3  ;;  %v904_v63 = vadd.f32 %v861_v44, %v795_v27  ;;  %917 = vst.msk [vmem:[#allocation2 + $0x10] sm:$0xff] %vm309_vm1, %v903_v48  ;;  %v1402_v53 = vrot.slane %v2834_v25, 2  ;;  %v1005_v38 = vrot.slane %v967_v24, 1  ;;  %v1006_v32 = vrot.slane %v968_v7, 1  ;;  %v517_v11 = vld [vmem:[#allocation2 + $0x58] sm:$0xff] }
  0x7d   : > { %488 = vst.msk [vmem:[#allocation2 + $0x28] sm:$0xff] %vm309_vm1, %v474_v9  ;;  %v1172_v26 = vld [vmem:[#allocation2 + $0x40] sm:$0xff]  ;;  %v1404_v31 = vrot.slane %v2838_v52, 2  ;;  %v1549_v57 = vrot.slane %v2850_v47, 2  ;;  %v544_v21 = vadd.f32 %v532_v50, %v516_v40  ;;  %v545_v44 = vadd.f32 %v533_v10, %v517_v11  ;;  %v3680_v50 = vld [vmem:[#allocation24_spill] sm:$0xff]  ;;  %v3682_v55 = vld [vmem:[#allocation23_spill] sm:$0xff] }
  0x7e   : > { %918 = vst.msk [vmem:[#allocation2 + $0x18] sm:$0xff] %vm309_vm1, %v904_v63  ;;  %v1173_v9 = vld [vmem:[#allocation2 + $0x48] sm:$0xff]  ;;  %v1297_v27 = vadd.f32 %v1255_v46, %v1172_v26  ;;  %v1550_v14 = vrot.slane %v2892_v51, 2  ;;  %v1552_v25 = vrot.slane %v2896_v49, 2  ;;  %v1008_v24 = vrot.slane %v969_v54, 1 }
  0x7f   : > { %v1298_v39 = vadd.f32 %v1257_v41, %v1173_v9  ;;  %556 = vst.msk [vmem:[#allocation2 + $0x50] sm:$0xff] %vm309_vm1, %v544_v21  ;;  %557 = vst.msk [vmem:[#allocation2 + $0x58] sm:$0xff] %vm309_vm1, %v545_v44  ;;  %v526_v40 = vmul.f32 %v2424_v2, %v2404_v45  ;;  %v527_v11 = vmul.f32 %v2432_v8, %v2404_v45  ;;  %v729_v51 = vrot.slane %v2708_v17, 1  ;;  %v2950_v44 = vld [vmem:[%s2355_s9 + $0x28] ss:$48 sps:$4 sm:$0xff]  }
  0x80   : > { %v1633_v15 = vld [vmem:[#allocation2] sm:$0xff]  ;;  %1313 = vst.msk [vmem:[#allocation2 + $0x40] sm:$0xff] %vm309_vm1, %v1297_v27  ;;  %v1007_v26 = vsel %vm703_vm2, %v1005_v38, %v1006_v32  ;;  %v730_v52 = vrot.slane %v2712_v22, 1  ;;  %v732_v47 = vrot.slane %v2717_v28, 1  ;;  %v2934_v17 = vmul.f32 %v2447_v23, %v2770_v0  ;;  %v1113_v22 = vld [vmem:[%s2355_s9 + $0x24] sm:$0xe] }
  0x81   : > { %v1634_v48 = vld [vmem:[#allocation2 + $0x8] sm:$0xff]  ;;  %1314 = vst.msk [vmem:[#allocation2 + $0x48] sm:$0xff] %vm309_vm1, %v1298_v39  ;;  %v2939_v28 = vmul.f32 %v2447_v23, %v2798_v19  ;;  %v2943_v38 = vmul.f32 %v2447_v23, %v2800_v30  ;;  %v1403_v54 = vsel %vm1232_vm3, %v1401_v59, %v1402_v53  ;;  %v1009_v41 = vsel %vm703_vm2, %v1006_v32, %v1008_v24  ;;  %v449_v24 = vld [vmem:[#allocation2 + $0x60] sm:$0xff] }
  0x82   : > { %v1649_v7 = vpack.c.bf16 %v1634_v48, %v1633_v15  ;;  %v510_v63 = vld [vmem:[#allocation2 + $0x20] sm:$0xff]  ;;  %v1405_v0 = vsel %vm1232_vm3, %v1402_v53, %v1404_v31  ;;  %v1115_v15 = vld [vmem:[%s2355_s9 + $0x2c] sm:$0x1]  ;;  %v2954_v9 = vsel %vm1232_vm3, %v1549_v57, %v1550_v14  ;;  %v2957_v30 = vsel %vm1232_vm3, %v1550_v14, %v1552_v25  ;;  %v598_v49 = vld [vmem:[%s2355_s9 + $0x5c] sm:$0x1] }
  0x83   : > { %v950_v46 = vld [vmem:[#allocation2 + $0x10] sm:$0xff]  ;;  %v538_v19 = vadd.f32 %v526_v40, %v510_v63  ;;  %v731_v32 = vsel %vm703_vm2, %v729_v51, %v730_v52  ;;  %v733_v27 = vsel %vm703_vm2, %v730_v52, %v732_v47  ;;  %v2962_v31 = vunpack.c.l.bf16 %v1113_v22  ;;  %v596_v22 = vld [vmem:[%s2355_s9 + $0x54] sm:$0xff]  }
  0x84   : > { %2017 = vmatprep.mubr.msk.bf16.mxu0 %vm309_vm1, %v1649_v7  ;;  %v511_v39 = vld [vmem:[#allocation2 + $0x28] sm:$0xff]  ;;  %v1044_v21 = vadd.f32 %v1007_v26, %v950_v46  ;;  %v467_v57 = vmul.f32 %v2387_v36, %v2856_v60  ;;  %v468_v14 = vmul.f32 %v2387_v36, %v2863_v1  ;;  %v2976_v25 = vunpack.c.l.bf16 %v2950_v44  ;;  %v375_v1 = vld [vmem:[#allocation2 + $0x30] sm:$0xff] }
  0x85   : > { %v539_v48 = vadd.f32 %v527_v11, %v511_v39  ;;  %v951_v59 = vld [vmem:[#allocation2 + $0x18] sm:$0xff]  ;;  %v450_v7 = vld [vmem:[#allocation2 + $0x68] sm:$0xff]  ;;  %550 = vst.msk [vmem:[#allocation2 + $0x20] sm:$0xff] %vm309_vm1, %v538_v19  ;;  %v2978_v40 = vunpack.c.l.bf16 %v1115_v15  ;;  %v1386_v11 = vrot.slane %v2624_v29, 2  ;;  %v1387_v26 = vrot.slane %v2630_v61, 2  ;;  %v1975_v61 = vld [vmem:[%s2969_s5] sm:$0xff]  }
  0x86   : > { %v1045_v53 = vadd.f32 %v1009_v41, %v951_v59  ;;  %1056 = vst.msk [vmem:[#allocation2 + $0x10] sm:$0xff] %vm309_vm1, %v1044_v21  ;;  %v645_v51 = vld [vmem:[#allocation2 + $0x50] sm:$0xff]  ;;  %v646_v52 = vld [vmem:[#allocation2 + $0x58] sm:$0xff]  ;;  %v481_v63 = vadd.f32 %v467_v57, %v449_v24  ;;  %v482_v39 = vadd.f32 %v468_v14, %v450_v7  ;;  %v3677_v15 = vrot.slane %v2568_v20, 2  ;;  %v3686_v7 = vld [vmem:[#allocation14_spill] sm:$0xff] }
  0x87   : > { %551 = vst.msk [vmem:[#allocation2 + $0x28] sm:$0xff] %vm309_vm1, %v539_v48  ;;  %v1329_v47 = vld [vmem:[#allocation2 + $0x40] sm:$0xff]  ;;  %v770_v46 = vadd.f32 %v731_v32, %v645_v51  ;;  %v771_v41 = vadd.f32 %v733_v27, %v646_v52  ;;  %v3678_v48 = vld [vmem:[#allocation13_spill] sm:$0xff]  ;;  %v3681_v10 = vrot.slane %v3680_v50, 1  ;;  %v3683_v4 = vrot.slane %v3682_v55, 1  ;;  %v3689_v52 = vld [vmem:[#allocation19_spill] sm:$0xff] }
  0x88   : > { %1057 = vst.msk [vmem:[#allocation2 + $0x18] sm:$0xff] %vm309_vm1, %v1045_v53  ;;  %v1330_v21 = vld [vmem:[#allocation2 + $0x48] sm:$0xff]  ;;  %v1438_v19 = vadd.f32 %v1403_v54, %v1329_v47  ;;  %v3679_v59 = vrot.slane %v3678_v48, 2  ;;  %v3684_v32 = vrot.slane %v2720_v37, 1  ;;  %v3687_v57 = vrot.slane %v3686_v7, 2  ;;  %495 = vst.msk [vmem:[#allocation2 + $0x60] sm:$0xff] %vm309_vm1, %v481_v63 }
  0x89   : > { %v2996_v53 = vsel %vm703_vm2, %v3683_v4, %v3681_v10  ;;  %v3685_v27 = vmov %v3681_v10  ;;  %v1439_v24 = vadd.f32 %v1405_v0, %v1330_v21  ;;  %v3688_v14 = vmov %v3677_v15  ;;  %786 = vst.msk [vmem:[#allocation2 + $0x50] sm:$0xff] %vm309_vm1, %v770_v46  ;;  %787 = vst.msk [vmem:[#allocation2 + $0x58] sm:$0xff] %vm309_vm1, %v771_v41  ;;  %v3690_v50 = vld [vmem:[#allocation12_spill] sm:$0xff] }
  0x8a   : > { %v1240_v29 = vsel %vm1232_vm3, %v3679_v59, %v3677_v15  ;;  %v3003_v54 = vsel %vm703_vm2, %v3685_v27, %v3684_v32  ;;  %v1242_v51 = vsel %vm1232_vm3, %v3688_v14, %v3687_v57  ;;  %v1389_v47 = vrot.slane %v3689_v52, 2  ;;  %496 = vst.msk [vmem:[#allocation2 + $0x68] sm:$0xff] %vm309_vm1, %v482_v39  ;;  %1452 = vst.msk [vmem:[#allocation2 + $0x40] sm:$0xff] %vm309_vm1, %v1438_v19  ;;  %v3693_v48 = vld [vmem:[#allocation8_spill] sm:$0xff] }
  0x8b   : > { %v1496_v4 = vmul.f32 %v2466_v42, %v2962_v31  ;;  %v3019_v37 = vsel %vm1232_vm3, %v1386_v11, %v1387_v26  ;;  %v3023_v20 = vmul.f32 %v2466_v42, %v2976_v25  ;;  %v3027_v55 = vmul.f32 %v2466_v42, %v2978_v40  ;;  %1453 = vst.msk [vmem:[#allocation2 + $0x48] sm:$0xff] %vm309_vm1, %v1439_v24 }
  0x8c   : > { %v3691_v10 = vrot.slane %v3690_v50, 1  ;;  %v3692_v0 = vrot.slane %v2502_v58, 1  ;;  %v3035_v41 = vunpack.c.l.bf16 %v596_v22  ;;  %v3037_v11 = vunpack.c.h.bf16 %v596_v22  ;;  %v639_v19 = vld [vmem:[#allocation2 + $0x20] sm:$0xff] }
  0x8d   : > { %v3039_v63 = vunpack.c.l.bf16 %v598_v49  ;;  %v3041_v39 = vunpack.c.l.bf16 %v1975_v61  ;;  %v1166_v21 = vld [vmem:[#allocation2 + $0x10] sm:$0xff]  ;;  %v816_v59 = vmul.f32 %v3693_v48, %v2843_v35  ;;  %v817_v58 = vmul.f32 %v3693_v48, %v2852_v62  ;;  %v1127_v62 = vld [vmem:[%s2355_s9 + $0x5c] sm:$0x1] }
  0x8e   : > { %v718_v46 = vsel %vm703_vm2, %v3692_v0, %v3691_v10  ;;  %v640_v15 = vld [vmem:[#allocation2 + $0x28] sm:$0xff]  ;;  %v818_v32 = vmul.f32 %v3693_v48, %v2854_v13  ;;  %v3049_v27 = vunpack.c.h.bf16 %v1975_v61  ;;  %v1291_v22 = vadd.f32 %v1240_v29, %v1166_v21 }
  0x8f   : > { %v764_v49 = vadd.f32 %v2881_v18, %v639_v19  ;;  %v765_v24 = vadd.f32 %v718_v46, %v640_v15  ;;  %v563_v7 = vmul.f32 %v3041_v39, %v2404_v45  ;;  %v1167_v57 = vld [vmem:[#allocation2 + $0x18] sm:$0xff]  ;;  %v1534_v14 = vrot.slane %v1496_v4, 2  ;;  %v1125_v4 = vld [vmem:[%s2355_s9 + $0x54] sm:$0xe]  ;;  %s3505_s9 = scalar_lea.vmem [#allocation3], %s1929_s8 }
  0x90   : > { %v979_v50 = vmul.f32 %v2430_v5, %v3035_v41  ;;  %v564_v10 = vmul.f32 %v3049_v27, %v2404_v45  ;;  %v1292_v0 = vadd.f32 %v1242_v51, %v1167_v57  ;;  %1307 = vst.msk [vmem:[#allocation2 + $0x10] sm:$0xff] %vm309_vm1, %v1291_v22  ;;  %v3061_v29 = vsel %vm1232_vm3, %v1387_v26, %v1389_v47  ;;  %v802_v46 = vld [vmem:[#allocation2 + $0x50] sm:$0xff]  ;;  %v803_v21 = vld [vmem:[#allocation2 + $0x58] sm:$0xff]  ;;  %v559_v22 = vld [vmem:[#allocation2 + $0x60] sm:$0xff]  ;;  %s1816_s11 = sshll.u32 %s3505_s9, 4  ;;  %s3528_s11 = int_to_ptr.vmem [resolvable:$true] %s1816_s11 }
  0x91   : > { %v980_v18 = vmul.f32 %v2430_v5, %v3037_v11  ;;  %v981_v61 = vmul.f32 %v2430_v5, %v3039_v63  ;;  %780 = vst.msk [vmem:[#allocation2 + $0x20] sm:$0xff] %vm309_vm1, %v764_v49  ;;  %781 = vst.msk [vmem:[#allocation2 + $0x28] sm:$0xff] %vm309_vm1, %v765_v24  ;;  %v862_v19 = vrot.slane %v816_v59, 1  ;;  %v863_v51 = vrot.slane %v817_v58, 1  ;;  %v3694_v26 = vld [vmem:[#allocation6_spill] sm:$0xff]  ;;  %v560_v24 = vld [vmem:[#allocation2 + $0x68] sm:$0xff] }
  0x92   : > { %v865_v15 = vrot.slane %v818_v32, 1  ;;  %v395_v47 = vmul.f32 %v3694_v26, %v2661_v33  ;;  %v1485_v57 = vld [vmem:[#allocation2 + $0x40] sm:$0xff]  ;;  %1308 = vst.msk [vmem:[#allocation2 + $0x18] sm:$0xff] %vm309_vm1, %v1292_v0  ;;  %v911_v3 = vadd.f32 %v2790_v16, %v802_v46  ;;  %v912_v49 = vadd.f32 %v2793_v43, %v803_v21  ;;  %v1486_v59 = vld [vmem:[#allocation2 + $0x48] sm:$0xff]  ;;  %s2114_s19 = scalar_lea.vmem %s3528_s11, 2048 }
  0x93   : > { %v567_v13 = vadd.f32 %v563_v7, %v559_v22  ;;  %v1579_v58 = vadd.f32 %v2954_v9, %v1485_v57  ;;  %v3695_v32 = vrot.slane %v3023_v20, 2  ;;  %v1025_v33 = vrot.slane %v979_v50, 1  ;;  %v376_v9 = vld [vmem:[#allocation2 + $0x38] sm:$0xff]  ;;  %p2115_p1 = scmp.ne.s32.totalorder %s3528_s11, %s2114_s19 }
  0x94   : > { %v568_v0 = vadd.f32 %v564_v10, %v560_v24  ;;  %v1580_v52 = vadd.f32 %v2957_v30, %v1486_v59  ;;  %925 = vst.msk [vmem:[#allocation2 + $0x50] sm:$0xff] %vm309_vm1, %v911_v3  ;;  %926 = vst.msk [vmem:[#allocation2 + $0x58] sm:$0xff] %vm309_vm1, %v912_v49  ;;  %v1026_v16 = vrot.slane %v980_v18, 1  ;;  %v1028_v43 = vrot.slane %v981_v61, 1 }
  0x95   : > { %v3080_v60 = vsel %vm1232_vm3, %v1534_v14, %v3695_v32  ;;  %v3086_v7 = vunpack.c.l.bf16 %v1125_v4  ;;  %571 = vst.msk [vmem:[#allocation2 + $0x60] sm:$0xff] %vm309_vm1, %v567_v13  ;;  %1591 = vst.msk [vmem:[#allocation2 + $0x40] sm:$0xff] %vm309_vm1, %v1579_v58  ;;  %v864_v14 = vsel %vm703_vm2, %v862_v19, %v863_v51  ;;  %v866_v50 = vsel %vm703_vm2, %v863_v51, %v865_v15  ;;  %v3696_v19 = vld [vmem:[#allocation17_spill] sm:$0xff]  ;;  %p2116_p2 = pnand %p2115_p1, %p2290_p3 }
  0x96   : > { %572 = vst.msk [vmem:[#allocation2 + $0x68] sm:$0xff] %vm309_vm1, %v568_v0  ;;  %v396_v3 = vmul.f32 %v3694_v26, %v2667_v34  ;;  %v411_v30 = vadd.f32 %v395_v47, %v375_v1  ;;  %1592 = vst.msk [vmem:[#allocation2 + $0x48] sm:$0xff] %vm309_vm1, %v1580_v52  ;;  %v3097_v10 = vunpack.c.h.bf16 %v2950_v44  ;;  %v3099_v18 = vunpack.c.l.bf16 %v1127_v62 }
  0x97   : > { %v970_v13 = vmul.f32 %v2424_v2, %v2430_v5  ;;  %v971_v61 = vmul.f32 %v2432_v8, %v2430_v5  ;;  %v1323_v4 = vld [vmem:[#allocation2 + $0x10] sm:$0xff]  ;;  %v1258_v46 = vrot.slane %v2804_v12, 2  ;;  %v1259_v21 = vrot.slane %v2808_v56, 2  ;;  %p2117_p4 = pneg %p2116_p2 }
  0x98   : > { %v796_v34 = vld [vmem:[#allocation2 + $0x20] sm:$0xff]  ;;  %v797_v1 = vld [vmem:[#allocation2 + $0x28] sm:$0xff]  ;;  %v972_v52 = vmul.f32 %v2430_v5, %v3696_v19  ;;  %v412_v44 = vadd.f32 %v396_v3, %v376_v9  ;;  %427 = vst.msk [vmem:[#allocation2 + $0x30] sm:$0xff] %vm309_vm1, %v411_v30  ;;  %v1432_v62 = vadd.f32 %v3019_v37, %v1323_v4  ;;  %v1027_v51 = vsel %vm703_vm2, %v1025_v33, %v1026_v16 }
  0x99   : > { %v905_v15 = vadd.f32 %v864_v14, %v796_v34  ;;  %v906_v22 = vadd.f32 %v866_v50, %v797_v1  ;;  %v1324_v47 = vld [vmem:[#allocation2 + $0x18] sm:$0xff]  ;;  %v1029_v57 = vsel %vm703_vm2, %v1026_v16, %v1028_v43  ;;  %v1261_v12 = vrot.slane %v2813_v6, 2 }
  0x9a   : > { %v1406_v56 = vrot.slane %v2934_v17, 2  ;;  %v1407_v49 = vrot.slane %v2939_v28, 2  ;;  %428 = vst.msk [vmem:[#allocation2 + $0x38] sm:$0xff] %vm309_vm1, %v412_v44  ;;  %v1433_v24 = vadd.f32 %v3061_v29, %v1324_v47  ;;  %1446 = vst.msk [vmem:[#allocation2 + $0x10] sm:$0xff] %vm309_vm1, %v1432_v62  ;;  %v1409_v37 = vrot.slane %v2943_v38, 2 }
  0x9b   : > { %919 = vst.msk [vmem:[#allocation2 + $0x20] sm:$0xff] %vm309_vm1, %v905_v15  ;;  %920 = vst.msk [vmem:[#allocation2 + $0x28] sm:$0xff] %vm309_vm1, %v906_v22  ;;  %v1010_v59 = vrot.slane %v970_v13, 1  ;;  %v1011_v58 = vrot.slane %v971_v61, 1  ;;  %v958_v32 = vld [vmem:[#allocation2 + $0x50] sm:$0xff]  ;;  %v959_v6 = vld [vmem:[#allocation2 + $0x58] sm:$0xff]  ;;  %v828_v28 = vmul.f32 %v3693_v48, %v3035_v41  ;;  %v829_v29 = vmul.f32 %v3693_v48, %v3037_v11 }
  0x9c   : > { %v1013_v33 = vrot.slane %v972_v52, 1  ;;  %v647_v17 = vld [vmem:[#allocation2 + $0x60] sm:$0xff]  ;;  %v461_v0 = vmul.f32 %v2424_v2, %v2387_v36  ;;  %1447 = vst.msk [vmem:[#allocation2 + $0x18] sm:$0xff] %vm309_vm1, %v1433_v24  ;;  %v1052_v16 = vadd.f32 %v1027_v51, %v958_v32  ;;  %v1053_v43 = vadd.f32 %v1029_v57, %v959_v6  ;;  %v3165_v24 = vld [vmem:[%s2969_s5 + $0x8] sm:$0x1] }
  0x9d   : > { %v1641_v38 = vld [vmem:[#allocation2 + $0x40] sm:$0xff]  ;;  %v648_v9 = vld [vmem:[#allocation2 + $0x68] sm:$0xff]  ;;  %v772_v14 = vadd.f32 %v2996_v53, %v647_v17  ;;  %v830_v50 = vmul.f32 %v3693_v48, %v3039_v63  ;;  %v3134_v30 = vmul.f32 %v2466_v42, %v3086_v7  ;;  %v3138_v13 = vmul.f32 %v2466_v42, %v3097_v10 }
  0x9e   : > { %v1642_v3 = vld [vmem:[#allocation2 + $0x48] sm:$0xff]  ;;  %v773_v61 = vadd.f32 %v3003_v54, %v648_v9  ;;  %v462_v4 = vmul.f32 %v2432_v8, %v2387_v36  ;;  %v3697_v53 = vrot.slane %v3027_v55, 2  ;;  %v3698_v1 = vrot.slane %v3023_v20, 2  ;;  %1064 = vst.msk [vmem:[#allocation2 + $0x50] sm:$0xff] %vm309_vm1, %v1052_v16  ;;  %1065 = vst.msk [vmem:[#allocation2 + $0x58] sm:$0xff] %vm309_vm1, %v1053_v43  ;;  %v3699_v16 = vld [vmem:[#allocation16_spill] sm:$0xff] }
  0x9f   : > { %v1653_v34 = vpack.c.bf16 %v1642_v3, %v1641_v38  ;;  %v3152_v44 = vmul.f32 %v2466_v42, %v3099_v18  ;;  %v1012_v54 = vsel %vm703_vm2, %v1010_v59, %v1011_v58  ;;  %788 = vst.msk [vmem:[#allocation2 + $0x60] sm:$0xff] %vm309_vm1, %v772_v14  ;;  %v443_v62 = vld [vmem:[#allocation2 + $0x30] sm:$0xff]  ;;  %v1014_v55 = vsel %vm703_vm2, %v1011_v58, %v1013_v33  ;;  %v3703_v14 = vld [vmem:[#allocation18_spill] sm:$0xff] }
  0xa0   : > { %v1538_v52 = vsel %vm1232_vm3, %v3698_v1, %v3697_v53  ;;  %789 = vst.msk [vmem:[#allocation2 + $0x68] sm:$0xff] %vm309_vm1, %v773_v61  ;;  %v882_v20 = vrot.slane %v828_v28, 1  ;;  %v883_v51 = vrot.slane %v829_v29, 1  ;;  %v475_v15 = vadd.f32 %v461_v0, %v443_v62 }
  0xa1   : > { %2025 = vmatprep.mubr.msk.bf16.mxu1 %vm309_vm1, %v1653_v34  ;;  %v1260_v22 = vsel %vm1232_vm3, %v1258_v46, %v1259_v21  ;;  %v1262_v47 = vsel %vm1232_vm3, %v1259_v21, %v1261_v12  ;;  %v3162_v57 = vsel %vm1232_vm3, %v1406_v56, %v1407_v49  ;;  %v885_v59 = vrot.slane %v830_v50, 1  ;;  %v444_v32 = vld [vmem:[#allocation2 + $0x38] sm:$0xff]  ;;  %v1479_v6 = vld [vmem:[#allocation2 + $0x10] sm:$0xff] }
  0xa2   : > { %v3168_v58 = vsel %vm1232_vm3, %v1407_v49, %v1409_v37  ;;  %v952_v28 = vld [vmem:[#allocation2 + $0x20] sm:$0xff]  ;;  %v953_v29 = vld [vmem:[#allocation2 + $0x28] sm:$0xff]  ;;  %v476_v46 = vadd.f32 %v462_v4, %v444_v32  ;;  %489 = vst.msk [vmem:[#allocation2 + $0x30] sm:$0xff] %vm309_vm1, %v475_v15  ;;  %v1573_v21 = vadd.f32 %v3080_v60, %v1479_v6  ;;  %v3700_v43 = vrot.slane %v3699_v16, 2 }
  0xa3   : > { %v1046_v56 = vadd.f32 %v1012_v54, %v952_v28  ;;  %v1047_v0 = vadd.f32 %v1014_v55, %v953_v29  ;;  %v1480_v38 = vld [vmem:[#allocation2 + $0x18] sm:$0xff]  ;;  %v3701_v49 = vld [vmem:[#allocation15_spill] sm:$0xff]  ;;  %v3704_v50 = vrot.slane %v3703_v14, 2  ;;  %v3187_v60 = vmul.f32 %v2447_v23, %v2962_v31  ;;  %v3706_v6 = vld [vmem:[#allocation10_spill] sm:$0xff] }
  0xa4   : > { %v3702_v37 = vrot.slane %v3701_v49, 2  ;;  %v3705_v3 = vmov %v3700_v43  ;;  %v884_v4 = vsel %vm703_vm2, %v882_v20, %v883_v51  ;;  %490 = vst.msk [vmem:[#allocation2 + $0x38] sm:$0xff] %vm309_vm1, %v476_v46  ;;  %v1574_v34 = vadd.f32 %v1538_v52, %v1480_v38  ;;  %1585 = vst.msk [vmem:[#allocation2 + $0x10] sm:$0xff] %vm309_vm1, %v1573_v21  ;;  %v3708_v16 = vld [vmem:[#allocation7_spill] sm:$0xff]  ;;  %v3709_v49 = vld [vmem:[#allocation32_spill] sm:$0xff] }
  0xa5   : > { %v1247_v61 = vsel %vm1232_vm3, %v3705_v3, %v3704_v50  ;;  %1058 = vst.msk [vmem:[#allocation2 + $0x20] sm:$0xff] %vm309_vm1, %v1046_v56  ;;  %1059 = vst.msk [vmem:[#allocation2 + $0x28] sm:$0xff] %vm309_vm1, %v1047_v0  ;;  %v3196_v53 = vmul.f32 %v2447_v23, %v2976_v25  ;;  %v3635_v1 = vunpack.c.l.bf16 %v3165_v24  ;;  %v886_v54 = vsel %vm703_vm2, %v883_v51, %v885_v59  ;;  %v1174_v62 = vld [vmem:[#allocation2 + $0x50] sm:$0xff]  ;;  %v1175_v55 = vld [vmem:[#allocation2 + $0x58] sm:$0xff] }
  0xa6   : > { %v1245_v9 = vsel %vm1232_vm3, %v3702_v37, %v3700_v43  ;;  %v3202_v20 = vmul.f32 %v2447_v23, %v2978_v40  ;;  %v804_v52 = vld [vmem:[#allocation2 + $0x60] sm:$0xff]  ;;  %v1070_v15 = vmul.f32 %v3041_v39, %v2430_v5  ;;  %v1071_v32 = vmul.f32 %v3049_v27, %v2430_v5  ;;  %1586 = vst.msk [vmem:[#allocation2 + $0x18] sm:$0xff] %vm309_vm1, %v1574_v34  ;;  %v3707_v0 = vld [vmem:[#allocation11_spill] sm:$0xff]  ;;  %v383_v14 = vld [vmem:[#allocation2 + $0x70] sm:$0xff] }
  0xa7   : > { %v528_v28 = vmul.f32 %v2404_v45, %v3706_v6  ;;  %v1299_v29 = vadd.f32 %v1260_v22, %v1174_v62  ;;  %v1300_v51 = vadd.f32 %v1262_v47, %v1175_v55  ;;  %v805_v59 = vld [vmem:[#allocation2 + $0x68] sm:$0xff]  ;;  %v913_v46 = vadd.f32 %v884_v4, %v804_v52  ;;  %v384_v22 = vld [vmem:[#allocation2 + $0x78] sm:$0xff]  ;;  %v3711_v3 = vld [vmem:[#allocation26_spill] sm:$0xff] }
  0xa8   : > { %v1072_v21 = vmul.f32 %v2430_v5, %v3635_v1  ;;  %v914_v56 = vadd.f32 %v886_v54, %v805_v59  ;;  %v529_v38 = vmul.f32 %v2404_v45, %v3707_v0  ;;  %v664_v43 = vmul.f32 %v3708_v16, %v2843_v35  ;;  %v3710_v47 = vld [vmem:[#allocation25_spill] sm:$0xff]  ;;  %v3712_v34 = vld [vmem:[#allocation34_spill] sm:$0xff]  ;;  %v3713_v62 = vld [vmem:[#allocation35_spill] sm:$0xff] }
  0xa9   : > { %v3220_v37 = vmul.f32 %v3708_v16, %v3709_v49  ;;  %1315 = vst.msk [vmem:[#allocation2 + $0x50] sm:$0xff] %vm309_vm1, %v1299_v29  ;;  %1316 = vst.msk [vmem:[#allocation2 + $0x58] sm:$0xff] %vm309_vm1, %v1300_v51  ;;  %v3226_v50 = vmul.f32 %v2466_v42, %v3710_v47  ;;  %v3230_v4 = vmul.f32 %v2466_v42, %v3711_v3  ;;  %v512_v35 = vld [vmem:[#allocation2 + $0x30] sm:$0xff]  ;;  %v1391_v52 = vrot.slane %v3187_v60, 2  ;;  %v3714_v49 = vld [vmem:[#allocation33_spill] sm:$0xff] }
  0xaa   : > { %927 = vst.msk [vmem:[#allocation2 + $0x60] sm:$0xff] %vm309_vm1, %v913_v46  ;;  %v403_v54 = vmul.f32 %v3694_v26, %v3712_v34  ;;  %v404_v55 = vmul.f32 %v3694_v26, %v3713_v62  ;;  %928 = vst.msk [vmem:[#allocation2 + $0x68] sm:$0xff] %vm309_vm1, %v914_v56  ;;  %v1082_v6 = vrot.slane %v1070_v15, 1  ;;  %v1083_v29 = vrot.slane %v1071_v32, 1 }
  0xab   : > { %v540_v51 = vadd.f32 %v528_v28, %v512_v35  ;;  %v1085_v59 = vrot.slane %v1072_v21, 1  ;;  %v513_v0 = vld [vmem:[#allocation2 + $0x38] sm:$0xff]  ;;  %v666_v1 = vmul.f32 %v3708_v16, %v3714_v49  ;;  %v1635_v33 = vld [vmem:[#allocation2 + $0x10] sm:$0xff]  ;;  %v1392_v3 = vrot.slane %v3196_v53, 2 }
  0xac   : > { %v419_v46 = vadd.f32 %v403_v54, %v383_v14  ;;  %v420_v12 = vadd.f32 %v404_v55, %v384_v22  ;;  %v1168_v17 = vld [vmem:[#allocation2 + $0x20] sm:$0xff]  ;;  %v1169_v34 = vld [vmem:[#allocation2 + $0x28] sm:$0xff]  ;;  %v541_v26 = vadd.f32 %v529_v38, %v513_v0  ;;  %v719_v60 = vrot.slane %v664_v43, 1 }
  0xad   : > { %552 = vst.msk [vmem:[#allocation2 + $0x30] sm:$0xff] %vm309_vm1, %v540_v51  ;;  %v720_v15 = vrot.slane %v3220_v37, 1  ;;  %v3715_v32 = vrot.slane %v3138_v13, 2  ;;  %v3716_v28 = vrot.slane %v3134_v30, 2  ;;  %v3717_v56 = vrot.slane %v3152_v44, 2  ;;  %v1636_v43 = vld [vmem:[#allocation2 + $0x18] sm:$0xff] }
  0xae   : > { %v1293_v53 = vadd.f32 %v1245_v9, %v1168_v17  ;;  %v1294_v38 = vadd.f32 %v1247_v61, %v1169_v34  ;;  %435 = vst.msk [vmem:[#allocation2 + $0x70] sm:$0xff] %vm309_vm1, %v419_v46  ;;  %436 = vst.msk [vmem:[#allocation2 + $0x78] sm:$0xff] %vm309_vm1, %v420_v12  ;;  %v1394_v37 = vrot.slane %v3202_v20, 2  ;;  %v3719_v30 = vld [vmem:[#allocation27_spill] sm:$0xff]  ;;  %v1539_v44 = vrot.slane %v3226_v50, 2  ;;  %v363_v34 = vld [vmem:[%s2969_s5 + $0xc] sm:$0xff]  }
  0xaf   : > { %v3249_v21 = vsel %vm1232_vm3, %v3716_v28, %v3715_v32  ;;  %v3718_v14 = vmov %v3715_v32  ;;  %v3263_v35 = vmul.f32 %v2466_v42, %v3719_v30  ;;  %v1084_v13 = vsel %vm703_vm2, %v1082_v6, %v1083_v29  ;;  %553 = vst.msk [vmem:[#allocation2 + $0x38] sm:$0xff] %vm309_vm1, %v541_v26  ;;  %v1157_v26 = vld [vmem:[%s2969_s5 + $0x14] sm:$0x1] }
  0xb0   : > { %v3256_v22 = vsel %vm1232_vm3, %v3718_v14, %v3717_v56  ;;  %v1650_v54 = vpack.c.bf16 %v1636_v43, %v1635_v33  ;;  %1309 = vst.msk [vmem:[#allocation2 + $0x20] sm:$0xff] %vm309_vm1, %v1293_v53  ;;  %1310 = vst.msk [vmem:[#allocation2 + $0x28] sm:$0xff] %vm309_vm1, %v1294_v38  ;;  %v1540_v17 = vrot.slane %v3230_v4, 2  ;;  %v1086_v12 = vsel %vm703_vm2, %v1083_v29, %v1085_v59  ;;  %v1331_v61 = vld [vmem:[#allocation2 + $0x50] sm:$0xff]  ;;  %v1332_v20 = vld [vmem:[#allocation2 + $0x58] sm:$0xff] }
  0xb1   : > { %v722_v9 = vrot.slane %v666_v1, 1  ;;  %v1393_v62 = vsel %vm1232_vm3, %v1391_v52, %v1392_v3  ;;  %v1066_v50 = vld [vmem:[#allocation2 + $0x60] sm:$0xff]  ;;  %v721_v55 = vsel %vm703_vm2, %v719_v60, %v720_v15  ;;  %v3276_v33 = vmul.f32 %v2424_v2, %v3693_v48  ;;  %v1067_v29 = vld [vmem:[#allocation2 + $0x68] sm:$0xff]  ;;  %v3321_v43 = vld [vmem:[%s2969_s5] sm:$0xe] }
  0xb2   : > { %v500_v6 = vmul.f32 %v3041_v39, %v2387_v36  ;;  %2018 = vmatmul.mubr.msk.bf16.vlgmr.msra.gmra.mrb[0].mxu0 %vm309_vm1, %v1650_v54  ;;  %v1440_v4 = vadd.f32 %v3162_v57, %v1331_v61  ;;  %v1441_v1 = vadd.f32 %v3168_v58, %v1332_v20  ;;  %v1096_v51 = vadd.f32 %v1084_v13, %v1066_v50  ;;  %v1155_v57 = vld [vmem:[%s2969_s5 + $0xc] sm:$0xe]  ;;  %v3311_v60 = vld [vmem:[%s2969_s5 + $0x4] ss:$12 sps:$4 sm:$0xff]  }
  0xb3   : > { %v501_v52 = vmul.f32 %v3049_v27, %v2387_v36  ;;  %v1395_v59 = vsel %vm1232_vm3, %v1392_v3, %v1394_v37  ;;  %v1542_v2 = vrot.slane %v3263_v35, 2  ;;  %v1097_v0 = vadd.f32 %v1086_v12, %v1067_v29 }
  0xb4   : > { %v3289_v49 = vmul.f32 %v2432_v8, %v3693_v48  ;;  %1454 = vst.msk [vmem:[#allocation2 + $0x50] sm:$0xff] %vm309_vm1, %v1440_v4  ;;  %1455 = vst.msk [vmem:[#allocation2 + $0x58] sm:$0xff] %vm309_vm1, %v1441_v1  ;;  %v3295_v58 = vsel %vm1232_vm3, %v1539_v44, %v1540_v17  ;;  %v3300_v36 = vmul.f32 %v2447_v23, %v3086_v7  ;;  %v641_v8 = vld [vmem:[#allocation2 + $0x30] sm:$0xff]  ;;  %v867_v14 = vrot.slane %v3276_v33, 1 }
  0xb5   : > { %1100 = vst.msk [vmem:[#allocation2 + $0x60] sm:$0xff] %vm309_vm1, %v1096_v51  ;;  %v3304_v3 = vmul.f32 %v2447_v23, %v3097_v10  ;;  %v723_v46 = vsel %vm703_vm2, %v720_v15, %v722_v9  ;;  %1101 = vst.msk [vmem:[#allocation2 + $0x68] sm:$0xff] %vm309_vm1, %v1097_v0  ;;  %v3315_v32 = vmul.f32 %v2447_v23, %v3099_v18  ;;  %v498_v53 = vld [vmem:[#allocation2 + $0x70] sm:$0xff]  ;;  %v499_v38 = vld [vmem:[#allocation2 + $0x78] sm:$0xff]  ;;  %v1161_v44 = vunpack.c.l.bf16 %v1155_v57 }
  0xb6   : > { %v766_v28 = vadd.f32 %v721_v55, %v641_v8  ;;  %v821_v56 = vmul.f32 %v3693_v48, %v3696_v19  ;;  %v642_v15 = vld [vmem:[#allocation2 + $0x38] sm:$0xff]  ;;  %v502_v37 = vadd.f32 %v500_v6, %v498_v53  ;;  %v503_v35 = vadd.f32 %v501_v52, %v499_v38  ;;  %v3720_v1 = vld [vmem:[#allocation36_spill] sm:$0xff]  ;;  %v3722_v51 = vld [vmem:[#allocation31_spill] sm:$0xff] }
  0xb7   : > { %v1162_v13 = vunpack.c.h.bf16 %v3311_v60  ;;  %v1325_v54 = vld [vmem:[#allocation2 + $0x20] sm:$0xff]  ;;  %v1326_v12 = vld [vmem:[#allocation2 + $0x28] sm:$0xff]  ;;  %v767_v9 = vadd.f32 %v723_v46, %v642_v15  ;;  %v868_v61 = vrot.slane %v3289_v49, 1  ;;  %v367_v19 = vunpack.c.l.bf16 %v363_v34  ;;  %v3724_v49 = vld [vmem:[#allocation37_spill] sm:$0xff] }
  0xb8   : > { %782 = vst.msk [vmem:[#allocation2 + $0x30] sm:$0xff] %vm309_vm1, %v766_v28  ;;  %v1163_v20 = vunpack.c.l.bf16 %v1157_v26  ;;  %v1434_v50 = vadd.f32 %v1393_v62, %v1325_v54  ;;  %v1435_v55 = vadd.f32 %v1395_v59, %v1326_v12  ;;  %v1543_v33 = vsel %vm1232_vm3, %v1540_v17, %v1542_v2  ;;  %504 = vst.msk [vmem:[#allocation2 + $0x70] sm:$0xff] %vm309_vm1, %v502_v37  ;;  %v3727_v12 = vld [vmem:[#allocation20_spill] sm:$0xff] }
  0xb9   : > { %v368_v4 = vunpack.c.h.bf16 %v363_v34  ;;  %505 = vst.msk [vmem:[#allocation2 + $0x78] sm:$0xff] %vm309_vm1, %v503_v35  ;;  %v1158_v6 = vunpack.c.l.bf16 %v3321_v43  ;;  %v3721_v29 = vrot.slane %v3720_v1, 2  ;;  %v3723_v52 = vrot.slane %v3722_v51, 2  ;;  %783 = vst.msk [vmem:[#allocation2 + $0x38] sm:$0xff] %vm309_vm1, %v767_v9 }
  0xba   : > { %v3725_v57 = vrot.slane %v3724_v49, 2  ;;  %v1411_v17 = vrot.slane %v3300_v36, 2  ;;  %1448 = vst.msk [vmem:[#allocation2 + $0x20] sm:$0xff] %vm309_vm1, %v1434_v50  ;;  %1449 = vst.msk [vmem:[#allocation2 + $0x28] sm:$0xff] %vm309_vm1, %v1435_v55  ;;  %v1412_v2 = vrot.slane %v3304_v3, 2  ;;  %v870_v8 = vrot.slane %v821_v56, 1 }
  0xbb   : > { %v1265_v0 = vsel %vm1232_vm3, %v3723_v52, %v3721_v29  ;;  %v3726_v62 = vmov %v3721_v29  ;;  %v1602_v46 = vmul.f32 %v2466_v42, %v1161_v44  ;;  %v1603_v34 = vmul.f32 %v2466_v42, %v1162_v13  ;;  %v1487_v26 = vld [vmem:[#allocation2 + $0x50] sm:$0xff]  ;;  %v1488_v28 = vld [vmem:[#allocation2 + $0x58] sm:$0xff] }
  0xbc   : > { %v1267_v59 = vsel %vm1232_vm3, %v3726_v62, %v3725_v57  ;;  %v1176_v53 = vld [vmem:[#allocation2 + $0x60] sm:$0xff]  ;;  %v1414_v38 = vrot.slane %v3315_v32, 2  ;;  %v869_v36 = vsel %vm703_vm2, %v867_v14, %v868_v61  ;;  %v565_v15 = vmul.f32 %v2404_v45, %v367_v19  ;;  %v1177_v56 = vld [vmem:[#allocation2 + $0x68] sm:$0xff]  ;;  %v3728_v50 = vld [vmem:[#allocation21_spill] sm:$0xff] }
  0xbd   : > { %v1604_v37 = vmul.f32 %v2466_v42, %v1163_v20  ;;  %v1581_v35 = vadd.f32 %v3249_v21, %v1487_v26  ;;  %v1582_v3 = vadd.f32 %v3256_v22, %v1488_v28  ;;  %v1301_v54 = vadd.f32 %v1265_v0, %v1176_v53  ;;  %v3729_v19 = vld [vmem:[#allocation22_spill] sm:$0xff] }
  0xbe   : > { %v566_v44 = vmul.f32 %v2404_v45, %v368_v4  ;;  %v1302_v13 = vadd.f32 %v1267_v59, %v1177_v56  ;;  %v973_v9 = vmul.f32 %v2430_v5, %v3727_v12  ;;  %v3358_v32 = vmul.f32 %v2430_v5, %v3728_v50 }
  0xbf   : > { %v1616_v14 = vrot.slane %v1602_v46, 2  ;;  %1593 = vst.msk [vmem:[#allocation2 + $0x50] sm:$0xff] %vm309_vm1, %v1581_v35  ;;  %1594 = vst.msk [vmem:[#allocation2 + $0x58] sm:$0xff] %vm309_vm1, %v1582_v3  ;;  %v798_v21 = vld [vmem:[#allocation2 + $0x30] sm:$0xff]  ;;  %v871_v22 = vsel %vm703_vm2, %v868_v61, %v870_v8  ;;  %v975_v45 = vmul.f32 %v2430_v5, %v3729_v19  ;;  %v1617_v20 = vrot.slane %v1603_v34, 2 }
  0xc0   : > { %1317 = vst.msk [vmem:[#allocation2 + $0x60] sm:$0xff] %vm309_vm1, %v1301_v54  ;;  %v1619_v55 = vrot.slane %v1604_v37, 2  ;;  %1318 = vst.msk [vmem:[#allocation2 + $0x68] sm:$0xff] %vm309_vm1, %v1302_v13  ;;  %v907_v4 = vadd.f32 %v869_v36, %v798_v21  ;;  %v561_v1 = vld [vmem:[#allocation2 + $0x70] sm:$0xff]  ;;  %v562_v29 = vld [vmem:[#allocation2 + $0x78] sm:$0xff]  ;;  %v676_v51 = vmul.f32 %v3708_v16, %v3035_v41  ;;  %v677_v52 = vmul.f32 %v3708_v16, %v3037_v11 }
  0xc1   : > { %v678_v61 = vmul.f32 %v3708_v16, %v3039_v63  ;;  %v799_v0 = vld [vmem:[#allocation2 + $0x38] sm:$0xff]  ;;  %v569_v49 = vadd.f32 %v565_v15, %v561_v1  ;;  %v570_v57 = vadd.f32 %v566_v44, %v562_v29  ;;  %v3374_v62 = vsel %vm1232_vm3, %v1616_v14, %v1617_v20  ;;  %v1481_v8 = vld [vmem:[#allocation2 + $0x20] sm:$0xff]  ;;  %v1482_v46 = vld [vmem:[#allocation2 + $0x28] sm:$0xff] }
  0xc2   : > { %v3377_v59 = vsel %vm1232_vm3, %v1617_v20, %v1619_v55  ;;  %v3380_v34 = vld [vmem:[%s2969_s5 + $0x8] sm:$0x1]  ;;  %v1159_v41 = vunpack.c.l.bf16 %v3311_v60  ;;  %v3386_v11 = vmul.f32 %v2466_v42, %v1158_v6  ;;  %v908_v63 = vadd.f32 %v871_v22, %v799_v0  ;;  %921 = vst.msk [vmem:[#allocation2 + $0x30] sm:$0xff] %vm309_vm1, %v907_v4 }
  0xc3   : > { %v1575_v16 = vadd.f32 %v3295_v58, %v1481_v8  ;;  %v1576_v26 = vadd.f32 %v1543_v33, %v1482_v46  ;;  %v1015_v28 = vrot.slane %v973_v9, 1  ;;  %v1016_v53 = vrot.slane %v3358_v32, 1  ;;  %573 = vst.msk [vmem:[#allocation2 + $0x70] sm:$0xff] %vm309_vm1, %v569_v49  ;;  %574 = vst.msk [vmem:[#allocation2 + $0x78] sm:$0xff] %vm309_vm1, %v570_v57  ;;  %v3730_v20 = vld [vmem:[#allocation9_spill] sm:$0xff] }
  0xc4   : > { %v1413_v36 = vsel %vm1232_vm3, %v1411_v17, %v1412_v2  ;;  %922 = vst.msk [vmem:[#allocation2 + $0x38] sm:$0xff] %vm309_vm1, %v908_v63  ;;  %v739_v15 = vrot.slane %v676_v51, 1  ;;  %v740_v37 = vrot.slane %v677_v52, 1  ;;  %v742_v35 = vrot.slane %v678_v61, 1 }
  0xc5   : > { %1587 = vst.msk [vmem:[#allocation2 + $0x20] sm:$0xff] %vm309_vm1, %v1575_v16  ;;  %1588 = vst.msk [vmem:[#allocation2 + $0x28] sm:$0xff] %vm309_vm1, %v1576_v26  ;;  %v1160_v58 = vunpack.c.l.bf16 %v3380_v34  ;;  %v1415_v33 = vsel %vm1232_vm3, %v1412_v2, %v1414_v38  ;;  %v1600_v3 = vmul.f32 %v2466_v42, %v1159_v41  ;;  %v1018_v56 = vrot.slane %v975_v45, 1 }
  0xc6   : > { %v1643_v54 = vld [vmem:[#allocation2 + $0x50] sm:$0xff]  ;;  %v1644_v17 = vld [vmem:[#allocation2 + $0x58] sm:$0xff]  ;;  %v1017_v32 = vsel %vm703_vm2, %v1015_v28, %v1016_v53  ;;  %v1611_v2 = vrot.slane %v3386_v11, 2  ;;  %v741_v38 = vsel %vm703_vm2, %v739_v15, %v740_v37  ;;  %v743_v21 = vsel %vm703_vm2, %v740_v37, %v742_v35 }
  0xc7   : > { %v1333_v44 = vld [vmem:[#allocation2 + $0x60] sm:$0xff]  ;;  %v1654_v13 = vpack.c.bf16 %v1644_v17, %v1643_v54  ;;  %v1334_v12 = vld [vmem:[#allocation2 + $0x68] sm:$0xff]  ;;  %v1601_v50 = vmul.f32 %v2466_v42, %v1160_v58  ;;  %v1612_v22 = vrot.slane %v1600_v3, 2  ;;  %v1019_v45 = vsel %vm703_vm2, %v1016_v53, %v1018_v56 }
  0xc8   : > { %v1442_v9 = vadd.f32 %v1413_v36, %v1333_v44  ;;  %v1443_v14 = vadd.f32 %v1415_v33, %v1334_v12  ;;  %v1193_v55 = vmul.f32 %v3730_v20, %v2962_v31  ;;  %v1194_v4 = vmul.f32 %v3730_v20, %v2976_v25  ;;  %v628_v53 = vld [vmem:[%s2969_s5 + $0x14] sm:$0x1] }
  0xc9   : > { %2026 = vmatmul.mubr.msk.bf16.vlgmr.msra.gmra.mrb[0].mxu1 %vm309_vm1, %v1654_v13  ;;  %v954_v19 = vld [vmem:[#allocation2 + $0x30] sm:$0xff]  ;;  %v931_v52 = vmul.f32 %v3041_v39, %v3693_v48  ;;  %v932_v61 = vmul.f32 %v3049_v27, %v3693_v48  ;;  %v3731_v0 = vunpack.c.l.bf16 %v3165_v24  ;;  %v1614_v49 = vrot.slane %v1601_v50, 2  ;;  %v626_v27 = vld [vmem:[%s2969_s5 + $0xc] sm:$0xff]   ;;  %s2118_s5 = sshll.u32 %s2211_s30, 4  ;;  %s2119_s5 = int_to_ptr.vmem [resolvable:$false] %s2118_s5 }
  0xca   : > { %1456 = vst.msk [vmem:[#allocation2 + $0x60] sm:$0xff] %vm309_vm1, %v1442_v9  ;;  %1457 = vst.msk [vmem:[#allocation2 + $0x68] sm:$0xff] %vm309_vm1, %v1443_v14  ;;  %v1048_v1 = vadd.f32 %v1017_v32, %v954_v19  ;;  %v649_v29 = vld [vmem:[#allocation2 + $0x70] sm:$0xff]  ;;  %v650_v51 = vld [vmem:[#allocation2 + $0x78] sm:$0xff]  ;;  %v1195_v25 = vmul.f32 %v3730_v20, %v2978_v40  ;;  %v1248_v26 = vrot.slane %v1193_v55, 2  ;;  %v1249_v28 = vrot.slane %v1194_v4, 2  ;;  %p2121_p5 = scmp.lt.s32.totalorder %s3528_s11, %s2119_s5 }
  0xcb   : > { %v933_v31 = vmul.f32 %v3693_v48, %v3731_v0  ;;  %v955_v57 = vld [vmem:[#allocation2 + $0x38] sm:$0xff]  ;;  %v774_v8 = vadd.f32 %v741_v38, %v649_v29  ;;  %v775_v46 = vadd.f32 %v743_v21, %v650_v51  ;;  %v1613_v48 = vsel %vm1232_vm3, %v1611_v2, %v1612_v22  ;;  %v3732_v2 = vld [vmem:[#allocation26_spill] sm:$0xff]  ;;  %s2120_s8 = scalar_lea.vmem %s2119_s5, 4096 }
  0xcc   : > { %v1637_v11 = vld [vmem:[#allocation2 + $0x20] sm:$0xff]  ;;  %v1638_v63 = vld [vmem:[#allocation2 + $0x28] sm:$0xff]  ;;  %v1049_v16 = vadd.f32 %v1019_v45, %v955_v57  ;;  %1060 = vst.msk [vmem:[#allocation2 + $0x30] sm:$0xff] %vm309_vm1, %v1048_v1  ;;  %v937_v40 = vrot.slane %v931_v52, 1  ;;  %v938_v24 = vrot.slane %v932_v61, 1  ;;  %v1615_v15 = vsel %vm1232_vm3, %v1612_v22, %v1614_v49  ;;  %p2122_p6 = scmp.lt.s32.totalorder %s2120_s8, %s2114_s19 }
  0xcd   : > { %v1651_v39 = vpack.c.bf16 %v1638_v63, %v1637_v11  ;;  %790 = vst.msk [vmem:[#allocation2 + $0x70] sm:$0xff] %vm309_vm1, %v774_v8  ;;  %791 = vst.msk [vmem:[#allocation2 + $0x78] sm:$0xff] %vm309_vm1, %v775_v46  ;;  %v940_v36 = vrot.slane %v933_v31, 1  ;;  %v1251_v37 = vrot.slane %v1195_v25, 2  ;;  %v632_v33 = vunpack.c.l.bf16 %v626_v27 }
  0xce   : > { %1061 = vst.msk [vmem:[#allocation2 + $0x38] sm:$0xff] %vm309_vm1, %v1049_v16  ;;  %v633_v3 = vunpack.c.h.bf16 %v626_v27  ;;  %v634_v56 = vunpack.c.l.bf16 %v628_v53  ;;  %v1250_v44 = vsel %vm1232_vm3, %v1248_v26, %v1249_v28  ;;  %v939_v12 = vsel %vm703_vm2, %v937_v40, %v938_v24  ;;  %v3733_v26 = vld [vmem:[#allocation28_spill] sm:$0xff]  ;;  %v3734_v27 = vld [vmem:[#allocation29_spill] sm:$0xff]  ;;  %p2123_p7 = por %p2122_p6, %p2121_p5 }
  0xcf   : > { %2021 = vmatprep.mubr.msk.bf16.mxu0 %vm309_vm1, %v1651_v39  ;;  %v941_v9 = vsel %vm703_vm2, %v938_v24, %v940_v36  ;;  %v1252_v32 = vsel %vm1232_vm3, %v1249_v28, %v1251_v37  ;;  %v1348_v14 = vmul.f32 %v2447_v23, %v3710_v47  ;;  %v1349_v38 = vmul.f32 %v2447_v23, %v3732_v2 }
  0xd0   : > { %v1073_v45 = vmul.f32 %v2430_v5, %v632_v33  ;;  %v1074_v55 = vmul.f32 %v2430_v5, %v633_v3  ;;  %v1075_v4 = vmul.f32 %v2430_v5, %v634_v56  ;;  %v1350_v29 = vmul.f32 %v2447_v23, %v3719_v30  ;;  %v3735_v33 = vld [vmem:[#allocation30_spill] sm:$0xff]  ;;  %p2124_p9 = pnand %p2123_p7, %p2117_p4 }
  0xd1   : > { %v1595_v35 = vld [vmem:[#allocation2 + $0x60] sm:$0xff]  ;;  %v1596_v54 = vld [vmem:[#allocation2 + $0x68] sm:$0xff]  ;;  %v1396_v61 = vrot.slane %v1348_v14, 2  ;;  %v1397_v0 = vrot.slane %v1349_v38, 2  ;;  %v1502_v28 = vmul.f32 %v2466_v42, %v3733_v26  ;;  %v1503_v53 = vmul.f32 %v2466_v42, %v3734_v27 }
  0xd2   : > { %v1625_v17 = vadd.f32 %v1613_v48, %v1595_v35  ;;  %v1626_v13 = vadd.f32 %v1615_v15, %v1596_v54  ;;  %v1087_v31 = vrot.slane %v1073_v45, 1  ;;  %v1088_v49 = vrot.slane %v1074_v55, 1 }
  0xd3   : > { %v1170_v50 = vld [vmem:[#allocation2 + $0x30] sm:$0xff]  ;;  %v1090_v5 = vrot.slane %v1075_v4, 1  ;;  %v1399_v57 = vrot.slane %v1350_v29, 2  ;;  %v1398_v30 = vsel %vm1232_vm3, %v1396_v61, %v1397_v0  ;;  %v1205_v36 = vmul.f32 %v3730_v20, %v3086_v7 }
  0xd4   : > { %1629 = vst.msk [vmem:[#allocation2 + $0x60] sm:$0xff] %vm309_vm1, %v1625_v17  ;;  %1630 = vst.msk [vmem:[#allocation2 + $0x68] sm:$0xff] %vm309_vm1, %v1626_v13  ;;  %v1295_v21 = vadd.f32 %v1250_v44, %v1170_v50  ;;  %v929_v22 = vld [vmem:[#allocation2 + $0x70] sm:$0xff]  ;;  %v930_v19 = vld [vmem:[#allocation2 + $0x78] sm:$0xff]  ;;  %v1089_v11 = vsel %vm703_vm2, %v1087_v31, %v1088_v49  ;;  %v1206_v15 = vmul.f32 %v3730_v20, %v3097_v10  ;;  %v1544_v44 = vrot.slane %v1502_v28, 2 }
  0xd5   : > { %v1171_v1 = vld [vmem:[#allocation2 + $0x38] sm:$0xff]  ;;  %v944_v51 = vadd.f32 %v939_v12, %v929_v22  ;;  %v945_v47 = vadd.f32 %v941_v9, %v930_v19  ;;  %v1091_v63 = vsel %vm703_vm2, %v1088_v49, %v1090_v5  ;;  %v1400_v39 = vsel %vm1232_vm3, %v1397_v0, %v1399_v57 }
  0xd6   : > { %v1296_v52 = vadd.f32 %v1252_v32, %v1171_v1  ;;  %1311 = vst.msk [vmem:[#allocation2 + $0x30] sm:$0xff] %vm309_vm1, %v1295_v21  ;;  %v1207_v37 = vmul.f32 %v3730_v20, %v3099_v18  ;;  %v1504_v3 = vmul.f32 %v2466_v42, %v3735_v33  ;;  %v1545_v13 = vrot.slane %v1503_v53, 2 }
  0xd7   : > { %946 = vst.msk [vmem:[#allocation2 + $0x70] sm:$0xff] %vm309_vm1, %v944_v51  ;;  %947 = vst.msk [vmem:[#allocation2 + $0x78] sm:$0xff] %vm309_vm1, %v945_v47  ;;  %v1268_v7 = vrot.slane %v1205_v36, 2  ;;  %v1269_v10 = vrot.slane %v1206_v15, 2  ;;  %v1460_v21 = vmul.f32 %v2447_v23, %v1158_v6  ;;  %v1461_v22 = vmul.f32 %v2447_v23, %v1159_v41 }
  0xd8   : > { %1312 = vst.msk [vmem:[#allocation2 + $0x38] sm:$0xff] %vm309_vm1, %v1296_v52  ;;  %v1271_v18 = vrot.slane %v1207_v37, 2  ;;  %v1547_v20 = vrot.slane %v1504_v3, 2  ;;  %v1546_v12 = vsel %vm1232_vm3, %v1544_v44, %v1545_v13  ;;  %v1462_v19 = vmul.f32 %v2447_v23, %v1160_v58 }
  0xd9   : > { %v1270_v42 = vsel %vm1232_vm3, %v1268_v7, %v1269_v10  ;;  %v1466_v43 = vrot.slane %v1460_v21, 2  ;;  %v1467_v60 = vrot.slane %v1461_v22, 2 }
  0xda   : > { %v1272_v9 = vsel %vm1232_vm3, %v1269_v10, %v1271_v18  ;;  %v1548_v32 = vsel %vm1232_vm3, %v1545_v13, %v1547_v20  ;;  %v1469_v6 = vrot.slane %v1462_v19, 2 }
  0xdb   : > { %v1645_v25 = vld [vmem:[#allocation2 + $0x60] sm:$0xff]  ;;  %v1646_v8 = vld [vmem:[#allocation2 + $0x68] sm:$0xff]  ;;  %v1468_v41 = vsel %vm1232_vm3, %v1466_v43, %v1467_v60 }
  0xdc   : > { %v1655_v46 = vpack.c.bf16 %v1646_v8, %v1645_v25  ;;  %v1470_v34 = vsel %vm1232_vm3, %v1467_v60, %v1469_v6 }
  0xdd   : > { %v1327_v16 = vld [vmem:[#allocation2 + $0x30] sm:$0xff] }
  0xde   : > { %2029 = vmatprep.mubr.msk.bf16.mxu1 %vm309_vm1, %v1655_v46  ;;  %v1436_v48 = vadd.f32 %v1398_v30, %v1327_v16  ;;  %v1068_v40 = vld [vmem:[#allocation2 + $0x70] sm:$0xff]  ;;  %v1069_v24 = vld [vmem:[#allocation2 + $0x78] sm:$0xff] }
  0xdf   : > { %v1328_v35 = vld [vmem:[#allocation2 + $0x38] sm:$0xff]  ;;  %v1098_v56 = vadd.f32 %v1089_v11, %v1068_v40  ;;  %v1099_v54 = vadd.f32 %v1091_v63, %v1069_v24 }
  0xe0   : > { %v1437_v17 = vadd.f32 %v1400_v39, %v1328_v35  ;;  %1450 = vst.msk [vmem:[#allocation2 + $0x30] sm:$0xff] %vm309_vm1, %v1436_v48 }
  0xe1   : > { %1102 = vst.msk [vmem:[#allocation2 + $0x70] sm:$0xff] %vm309_vm1, %v1098_v56  ;;  %1103 = vst.msk [vmem:[#allocation2 + $0x78] sm:$0xff] %vm309_vm1, %v1099_v54 }
  0xe2   : > { %1451 = vst.msk [vmem:[#allocation2 + $0x38] sm:$0xff] %vm309_vm1, %v1437_v17 }
  0xe7   : > { %v1483_v50 = vld [vmem:[#allocation2 + $0x30] sm:$0xff] }
  0xe8   : > { %v1577_v14 = vadd.f32 %v1546_v12, %v1483_v50  ;;  %v1178_v2 = vld [vmem:[#allocation2 + $0x70] sm:$0xff]  ;;  %v1179_v38 = vld [vmem:[#allocation2 + $0x78] sm:$0xff] }
  0xe9   : > { %v1484_v45 = vld [vmem:[#allocation2 + $0x38] sm:$0xff]  ;;  %v1303_v55 = vadd.f32 %v1270_v42, %v1178_v2  ;;  %v1304_v4 = vadd.f32 %v1272_v9, %v1179_v38 }
  0xea   : > { %v1578_v1 = vadd.f32 %v1548_v32, %v1484_v45  ;;  %1589 = vst.msk [vmem:[#allocation2 + $0x30] sm:$0xff] %vm309_vm1, %v1577_v14 }
  0xeb   : > { %1319 = vst.msk [vmem:[#allocation2 + $0x70] sm:$0xff] %vm309_vm1, %v1303_v55  ;;  %1320 = vst.msk [vmem:[#allocation2 + $0x78] sm:$0xff] %vm309_vm1, %v1304_v4 }
  0xec   : > { %1590 = vst.msk [vmem:[#allocation2 + $0x38] sm:$0xff] %vm309_vm1, %v1578_v1 }
  0xf1   : > { %v1639_v23 = vld [vmem:[#allocation2 + $0x30] sm:$0xff] }
  0xf2   : > { %v1458_v58 = vld [vmem:[#allocation2 + $0x70] sm:$0xff]  ;;  %v1459_v29 = vld [vmem:[#allocation2 + $0x78] sm:$0xff] }
  0xf3   : > { %v1640_v51 = vld [vmem:[#allocation2 + $0x38] sm:$0xff]  ;;  %v1473_v47 = vadd.f32 %v1468_v41, %v1458_v58  ;;  %v1474_v52 = vadd.f32 %v1470_v34, %v1459_v29 }
  0xf4   : > { %v1652_v61 = vpack.c.bf16 %v1640_v51, %v1639_v23 }
  0xf5   : > { %1475 = vst.msk [vmem:[#allocation2 + $0x70] sm:$0xff] %vm309_vm1, %v1473_v47  ;;  %1476 = vst.msk [vmem:[#allocation2 + $0x78] sm:$0xff] %vm309_vm1, %v1474_v52 }
  0xf6   : > { %2022 = vmatmul.mubr.msk.bf16.gmra.mrb[4].mxu0 %vm309_vm1, %v1652_v61 }
  0xfc   : > { %v1597_v0 = vld [vmem:[#allocation2 + $0x70] sm:$0xff]  ;;  %v1598_v31 = vld [vmem:[#allocation2 + $0x78] sm:$0xff] }
  0xfd   : > { %v1627_v49 = vadd.f32 %v3374_v62, %v1597_v0  ;;  %v1628_v5 = vadd.f32 %v3377_v59, %v1598_v31 }
  0xff   : > { %1631 = vst.msk [vmem:[#allocation2 + $0x70] sm:$0xff] %vm309_vm1, %v1627_v49  ;;  %1632 = vst.msk [vmem:[#allocation2 + $0x78] sm:$0xff] %vm309_vm1, %v1628_v5 }
 0x106   : > { %v1647_v57 = vld [vmem:[#allocation2 + $0x70] sm:$0xff]  ;;  %v1648_v25 = vld [vmem:[#allocation2 + $0x78] sm:$0xff] }
 0x107   : > { %v1656_v8 = vpack.c.bf16 %v1648_v25, %v1647_v57 }
 0x109   : > { %2030 = vmatmul.mubr.msk.bf16.gmra.mrb[4].mxu1 %vm309_vm1, %v1656_v8 }
 0x185   : > { %v2019_v30 = vpop.f32.mrb[0].mxu0 }
 0x186   : > { %1785 = vst [vmem:[%s3505_s9 + $0x10] sm:$0xff] %v2019_v30  ;;  %v1720_v62 = vpop.f32.mrb[1].mxu0 }
 0x187   : > { %1783 = vst [vmem:[%s3505_s9] sm:$0xff] %v1720_v62  ;;  %v2020_v59 = vpop.f32.mrb[2].mxu0 }
 0x188   : > { %1786 = vst [vmem:[%s3505_s9 + $0x18] sm:$0xff] %v2020_v59  ;;  %v1723_v46 = vpop.f32.mrb[3].mxu0 }
 0x189   : > { %1784 = vst [vmem:[%s3505_s9 + $0x8] sm:$0xff] %v1723_v46 }
 0x19c   : > { %v2027_v11 = vpop.f32.mrb[0].mxu1 }
 0x19d   : > { %1793 = vst [vmem:[%s3505_s9 + $0x50] sm:$0xff] %v2027_v11  ;;  %v1752_v63 = vpop.f32.mrb[1].mxu1 }
 0x19e   : > { %1791 = vst [vmem:[%s3505_s9 + $0x40] sm:$0xff] %v1752_v63  ;;  %v2028_v16 = vpop.f32.mrb[2].mxu1 }
 0x19f   : > { %1794 = vst [vmem:[%s3505_s9 + $0x58] sm:$0xff] %v2028_v16  ;;  %v1755_v39 = vpop.f32.mrb[3].mxu1 }
 0x1a0   : > { %1792 = vst [vmem:[%s3505_s9 + $0x48] sm:$0xff] %v1755_v39 }
 0x1c9   : > { %v2023_v26 = vpop.f32.mrb[4].mxu0 }
 0x1ca   : > { %1789 = vst [vmem:[%s3505_s9 + $0x30] sm:$0xff] %v2023_v26  ;;  %v1736_v28 = vpop.f32.mrb[5].mxu0 }
 0x1cb   : > { %1787 = vst [vmem:[%s3505_s9 + $0x20] sm:$0xff] %v1736_v28  ;;  %v2024_v27 = vpop.f32.mrb[6].mxu0 }
 0x1cc   : > { %1790 = vst [vmem:[%s3505_s9 + $0x38] sm:$0xff] %v2024_v27  ;;  %v1739_v53 = vpop.f32.mrb[7].mxu0 }
 0x1cd   : > { %1788 = vst [vmem:[%s3505_s9 + $0x28] sm:$0xff] %v1739_v53 }
 0x1dc   : > { %v2031_v48 = vpop.f32.mrb[4].mxu1 }
 0x1dd   : > { %1797 = vst [vmem:[%s3505_s9 + $0x70] sm:$0xff] %v2031_v48  ;;  %v1768_v40 = vpop.f32.mrb[5].mxu1 }
 0x1de   : > { %1795 = vst [vmem:[%s3505_s9 + $0x60] sm:$0xff] %v1768_v40  ;;  %v2032_v24 = vpop.f32.mrb[6].mxu1 }
 0x1df   : > { %1798 = vst [vmem:[%s3505_s9 + $0x78] sm:$0xff] %v2032_v24  ;;  %v1771_v36 = vpop.f32.mrb[7].mxu1 }
 0x1e0   : > { %1796 = vst [vmem:[%s3505_s9 + $0x68] sm:$0xff] %v1771_v36 }
 0x1e1   : > { %2127 = shalt.err (!%p2124_p9)
}
 0x1e2   : > { %s2128_s6 = scalar_lea.hbm %s3526_s27, 2048  ;;  %s2132_s12 = scalar_lea.hbm %s3591_s4, 8192 }
 0x1e3   : > { %p2129_p10 = scmp.ne.s32.totalorder %s3526_s27, %s2128_s6  ;;  %p2133_p13 = scmp.lt.u32.totalorder %s3526_s27, %s3591_s4 }
 0x1e4   : > { %p2134_p0 = scmp.lt.u32.totalorder %s2132_s12, %s2128_s6  ;;  %p2136_p2 = scmp.lt.u32.totalorder %s2128_s6, %s3526_s27 }
 0x1e5   : > { %p2130_p11 = pnand %p2129_p10, %p2290_p3 }
 0x1e6   : > { %p2135_p1 = por %p2134_p0, %p2133_p13 }
 0x1e7   : > { %p2131_p12 = pneg %p2130_p11 }
 0x1e8   : > { %p2137_p4 = por %p2136_p2, %p2135_p1 }
 0x1ea   : > { %p2138_p5 = pnand %p2137_p4, %p2131_p12 }
 0x1ec   : > { %2141 = shalt.err (!%p2138_p5)
}
 0x1ed   : > { %s2212_s13 = smov 128   ;;  %s2213_s24 = smov 8  }
 0x1ee   : > { %2040 = dma.vmem_to_hbm [thread:$0]  (%p2290_p3), %s3528_s11, 2048, %s3526_s27, %s3535_s18, %s2212_s13, %s2212_s13, %s2213_s24  }
 0x1ef PF: > { %p2046_p6 = scmp.ge.s32.totalorder %s2208_s22, 2  ;;  %s1831_s19 = sand.u32 1, %s2180_s15  }
 0x1f0   : > { %s1832_s30 = scalar_lea.sflag [#allocation4], %s1831_s19 }
 0x1f1   : > { %p2043_p7 = pnand %p2046_p6, %p2299_p8 }
 0x1f3   : > { %2175 = dma.done.wait (!%p2043_p7), %s1832_s30, 2048  }
 0x1f4   : > { %2177 = vsyncadd (!%p2043_p7), %s1832_s30, 4294965248  ;;  %s17_s22 = sadd.s32 1, %s2208_s22   ;;  %s3736_s15 = smov %s2184_s16 }
 0x1f5   : > { %p14_p9 = scmp.ge.s32.totalorder %s17_s22, 6   ;;  %s3737_s16 = smov %s2188_s17 }
 0x1f6   : > { %s3738_s17 = smov %s2308_s7  ;;  %s3739_s18 = smov %s2200_s20 }
 0x1f7   : > { %s3740_s19 = smov %s2204_s21  ;;  %s3741_s20 = smov %s3744_s25 }
 0x1f8   : > { %s3742_s21 = smov %s3748_s26  ;;  %16 = sbr.rel (!%p14_p9) target bundleno = 5 (0x5), region = 76 }
 0x1ff   :  { %1837 = vsyncpa [#allocation4], 1 }
 0x200   :  { %1839 = vsyncpa [#allocation4 + $0x1], 1 }

</bundles_post_ra>
